<compile_context>
chip_gen: v7x
topology: tpu7x:2x2x1
jax: 0.10.0
libtpu: 0.0.40
codegen_flags: <defaults>
</compile_context>

<pallas_src>
import math
import numpy as np
import jax
import jax.numpy as jnp
from jax.experimental import pallas as pl
from jax.experimental.pallas import tpu as pltpu

# -----------------------------------------------------------------------------
# Config (small shapes, consistent with the PyTorch module constructor)
# -----------------------------------------------------------------------------
B, N = 2, 8            # batch, sequence length
C_S, C_Z = 32, 16      # seq_dim_in, pair_dim_in
D_QK, D_V = 16, 16     # scalar_qk_dim, scalar_v_dim
P_QK, P_V = 4, 4       # point_qk_num, point_v_num
H = 4                  # n_head
DIST_EPS = 1e-8

SCALAR_W = math.sqrt(1.0 / (3.0 * max(D_QK, 1) * 1.0))
POINT_W = math.sqrt(1.0 / (3.0 * max(P_QK, 1) * 9.0 / 2.0))
PAIR_W = math.sqrt(1.0 / 3.0)
NEG_INF = float(jnp.finfo(jnp.float32).min)

OUT_PER_HEAD = D_V + P_V * 3 + C_Z      # 44 lanes per head
D_OUT = H * OUT_PER_HEAD                # 176 lanes total (lane-dense output)


# -----------------------------------------------------------------------------
# Pallas kernel: per-batch IPA attention core
# -----------------------------------------------------------------------------
def _ipa_attn_kernel(pvec_ref,                    # SMEM [3+2H]: cs, cp, cb, cd_h..., -2cd_h...
                     sq_ref, sk_ref, sv_ref,      # VMEM [1, H, N, D]
                     sb_ref,                      # VMEM [1, H, N, N]   (pair bias, head-major)
                     pq_ref, pk_ref, pv_ref,      # VMEM [1, H, N, 3P]  (global-frame points)
                     z_ref,                       # VMEM [1, N*N, C_Z]  (pair tensor, i-major)
                     mask_ref,                    # VMEM [1, N, N]
                     out_ref):                    # VMEM [1, N, H*44]
    cs = pvec_ref[0]        # w0 * SCALAR_W
    cp = pvec_ref[1]        # w2 * PAIR_W
    cb = pvec_ref[2]        # attn-linear bias
    cdims = (((1,), (1,)), ((), ()))              # contract last dims of both operands

    # ---------------- head-invariant work (hoisted) ----------------
    maskz = mask_ref[0, :, :] == 0.0                                 # [N, N] bool
    z_flat = z_ref[0, :, :]                                          # [N*N, C_Z]
    ones_col = jnp.ones((N, 1), jnp.float32)
    row_i = jax.lax.broadcasted_iota(jnp.int32, (N, N * N), 0)       # i
    col_k = jax.lax.broadcasted_iota(jnp.int32, (N, N * N), 1)       # k = i'*N + j
    lo = row_i * N
    diag_mask = (col_k >= lo) & (col_k < lo + N)                     # keep block i' == i

    pieces = []
    for h in range(H):
        cd = pvec_ref[3 + h]          # w1 * (-0.5 * softplus(tpw_h) * POINT_W)
        m2cd = pvec_ref[3 + H + h]    # -2 * cd

        sq_h = sq_ref[0, h, :, :]                                    # [N, D_QK]
        sk_h = sk_ref[0, h, :, :]
        pq_h = pq_ref[0, h, :, :]                                    # [N, 3*P_QK]
        pk_h = pk_ref[0, h, :, :]

        # fused logits:  cs*<sq,sk> + cd*(|q|^2 + |k|^2) - 2cd*<pq,pk>
        q_sq = jnp.sum(pq_h * pq_h, axis=1, keepdims=True)           # [N, 1]
        k_sq = jnp.sum(pk_h * pk_h, axis=1, keepdims=True)           # [N, 1]
        q_cat = jnp.concatenate(
            [cs * sq_h, m2cd * pq_h, cd * q_sq, cd * ones_col], axis=1)   # [N, 30]
        k_cat = jnp.concatenate(
            [sk_h, pk_h, ones_col, k_sq], axis=1)                         # [N, 30]
        logits = jax.lax.dot_general(q_cat, k_cat, cdims,
                                     preferred_element_type=jnp.float32)  # [N, N]
        logits = logits + cp * sb_ref[0, h, :, :] + cb
        logits = jnp.where(maskz, NEG_INF, logits)

        # softmax over keys j (reciprocal on EUP)
        m = jnp.max(logits, axis=1, keepdims=True)
        e = jnp.exp(logits - m)
        attn = e * pl.reciprocal(jnp.sum(e, axis=1, keepdims=True), approx=True)

        # fused scalar-value + point-value aggregation: attn @ [sv | pv]
        v_cat = jnp.concatenate([sv_ref[0, h, :, :], pv_ref[0, h, :, :]], axis=1)
        sv_pv = jnp.dot(attn, v_cat, preferred_element_type=jnp.float32)  # [N, D_V+3P_V]

        # pair aggregation as ONE block-diagonal matmul:
        #   out_z[i, c] = sum_j attn[i, j] * z[i, j, c]
        attn_tiled = jnp.concatenate([attn] * N, axis=1)                  # [N, N*N]
        a_big = jnp.where(diag_mask, attn_tiled, 0.0)
        z_agg = jnp.dot(a_big, z_flat, preferred_element_type=jnp.float32)  # [N, C_Z]

        pieces.append(sv_pv)
        pieces.append(z_agg)

    # single lane-dense store: [N, H*(D_V + 3P_V + C_Z)] = [N, 176]
    out_ref[0, :, :] = jnp.concatenate(pieces, axis=1)


def ipa_attention_core(pvec, sq, sk, sv, sbT, pqg, pkg, pvg, z_flat, mask2d):
    grid_spec = pltpu.PrefetchScalarGridSpec(
        num_scalar_prefetch=1,
        grid=(B,),
        in_specs=[
            pl.BlockSpec((1, H, N, D_QK), lambda b, p: (b, 0, 0, 0)),       # sq
            pl.BlockSpec((1, H, N, D_QK), lambda b, p: (b, 0, 0, 0)),       # sk
            pl.BlockSpec((1, H, N, D_V), lambda b, p: (b, 0, 0, 0)),        # sv
            pl.BlockSpec((1, H, N, N), lambda b, p: (b, 0, 0, 0)),          # pair bias
            pl.BlockSpec((1, H, N, P_QK * 3), lambda b, p: (b, 0, 0, 0)),   # pq (global)
            pl.BlockSpec((1, H, N, P_QK * 3), lambda b, p: (b, 0, 0, 0)),   # pk (global)
            pl.BlockSpec((1, H, N, P_V * 3), lambda b, p: (b, 0, 0, 0)),    # pv (global)
            pl.BlockSpec((1, N * N, C_Z), lambda b, p: (b, 0, 0)),          # z flattened
            pl.BlockSpec((1, N, N), lambda b, p: (b, 0, 0)),                # mask2d
        ],
        out_specs=pl.BlockSpec((1, N, D_OUT), lambda b, p: (b, 0, 0)),
    )
    return pl.pallas_call(
        _ipa_attn_kernel,
        out_shape=jax.ShapeDtypeStruct((B, N, D_OUT), jnp.float32),
        grid_spec=grid_spec,
        compiler_params=pltpu.CompilerParams(dimension_semantics=("parallel",)),
    )(pvec, sq, sk, sv, sbT, pqg, pkg, pvg, z_flat, mask2d)


# -----------------------------------------------------------------------------
# Full forward (glue + Pallas kernel)
# -----------------------------------------------------------------------------
def ipa_forward_pallas(params, s, z, rot, tran, res_mask):
    def proj(x, W, b):
        return x @ W.T + b

    sq = proj(s, params['Wsq'], params['bsq']).reshape(B, N, H, D_QK).transpose(0, 2, 1, 3)
    sk = proj(s, params['Wsk'], params['bsk']).reshape(B, N, H, D_QK).transpose(0, 2, 1, 3)
    sv = proj(s, params['Wsv'], params['bsv']).reshape(B, N, H, D_V).transpose(0, 2, 1, 3)
    sbT = proj(z, params['Wsb'], params['bsb']).transpose(0, 3, 1, 2)           # [B, H, N, N]

    def point_proj(W, b, P):
        p = proj(s, W, b).reshape(B, N, H, P, 3)
        pg = jnp.einsum('bnxy,bnhpy->bnhpx', rot, p) + tran[:, :, None, None, :]
        return pg.transpose(0, 2, 1, 3, 4).reshape(B, H, N, P * 3)              # [B, H, N, 3P]

    pqg = point_proj(params['Wpq'], params['bpq'], P_QK)
    pkg = point_proj(params['Wpk'], params['bpk'], P_QK)
    pvg = point_proj(params['Wpv'], params['bpv'], P_V)

    mask2d = res_mask[:, :, None] * res_mask[:, None, :]
    z_flat = z.reshape(B, N * N, C_Z)

    # scalar vector (SMEM prefetch): [cs, cp, cb, cd_0..cd_{H-1}, -2cd_0..-2cd_{H-1}]
    w = params['Wattn'].reshape(-1)                                             # [w0, w1, w2]
    wb = params['battn'].reshape(-1)[0]
    coeff = -0.5 * jax.nn.softplus(params['tpw']) * POINT_W                     # [H]
    cd = w[1] * coeff
    pvec = jnp.concatenate([
        jnp.stack([w[0] * SCALAR_W, w[2] * PAIR_W, wb]),
        cd,
        -2.0 * cd,
    ]).astype(jnp.float32)                                                      # [3 + 2H]

    packed = ipa_attention_core(pvec, sq, sk, sv, sbT, pqg, pkg, pvg, z_flat, mask2d)
    packed = packed.reshape(B, N, H, OUT_PER_HEAD)
    out_s = packed[..., :D_V]                                                   # [B, N, H, D_V]
    out_p = packed[..., D_V:D_V + P_V * 3]                                      # [B, N, H, 3P_V]
    out_z = packed[..., D_V + P_V * 3:]                                         # [B, N, H, C_Z]

    # inverse rigid transform back into each residue's local frame + point norms
    rpg = out_p.reshape(B, N, H, P_V, 3)
    centered = rpg - tran[:, :, None, None, :]
    rp = jnp.einsum('bnyx,bnhpy->bnhpx', rot, centered)                         # rot^T applied
    rp_norm = jnp.sqrt(jnp.sum(rp * rp, axis=-1) + DIST_EPS)                    # [B, N, H, P_V]
    rp_flat = rp.reshape(B, N, H, P_V * 3)

    result = jnp.concatenate([out_s, rp_flat, rp_norm, out_z], axis=-1)         # [B, N, H, 48]
    result = result.reshape(B, N, H * (D_V + P_V * 4 + C_Z))
    return result @ params['Wout'].T + params['bout']                           # [B, N, C_S]


# -----------------------------------------------------------------------------
# Pure-JAX reference (mirrors the PyTorch forward literally) for validation
# -----------------------------------------------------------------------------
def ipa_forward_reference(params, s, z, rot, tran, res_mask):
    def proj(x, W, b):
        return x @ W.T + b

    sq = proj(s, params['Wsq'], params['bsq']).reshape(B, N, H, D_QK).transpose(0, 2, 1, 3)
    sk = proj(s, params['Wsk'], params['bsk']).reshape(B, N, H, D_QK).transpose(0, 2, 1, 3)
    sv = proj(s, params['Wsv'], params['bsv']).reshape(B, N, H, D_V).transpose(0, 2, 1, 3)
    sb = proj(z, params['Wsb'], params['bsb'])                                  # [B, N, N, H]

    def pt(W, b, P):
        p = proj(s, W, b).reshape(B, N, H, P, 3)
        pg = jnp.einsum('bnxy,bnhpy->bnhpx', rot, p) + tran[:, :, None, None, :]
        return pg.transpose(0, 2, 1, 3, 4).reshape(B * H, N, P, 3)              # (b h) n p c

    pqg = pt(params['Wpq'], params['bpq'], P_QK)
    pkg = pt(params['Wpk'], params['bpk'], P_QK)
    pvg = pt(params['Wpv'], params['bpv'], P_V)

    diff = pqg[:, :, None, :, :] - pkg[:, None, :, :, :]
    sqd = jnp.sum(diff * diff, axis=-1).sum(axis=-1)                            # [(BH), N, N]
    sqd = sqd.reshape(B, H, N, N).transpose(0, 2, 3, 1)                         # b i j h
    attn_point = -0.5 * jax.nn.softplus(params['tpw']) * sqd * POINT_W
    attn_scalar = jnp.einsum('bhid,bhjd->bijh', sq * SCALAR_W, sk)
    attn_pair = sb * PAIR_W
    cat = jnp.stack([attn_scalar, attn_point, attn_pair], axis=-1)
    logits = jnp.einsum('bijhk,k->bijh', cat, params['Wattn'][0]) + params['battn'][0]
    mask2d = res_mask[:, :, None] * res_mask[:, None, :]
    logits = jnp.where(mask2d[:, :, :, None] == 0, NEG_INF, logits)
    logits = logits.transpose(0, 3, 1, 2).reshape(B * H, N, N)
    attn = jax.nn.softmax(logits, axis=-1)

    sv_f = sv.reshape(B * H, N, D_V)
    result_scalar = jnp.einsum('bij,bjd->bid', attn, sv_f)
    result_point_global = jnp.einsum('bij,bjpc->bipc', attn, pvg)
    rot_ext = jnp.repeat(rot, H, axis=0)
    tran_ext = jnp.repeat(tran, H, axis=0)
    centered = result_point_global - tran_ext[:, :, None, :]
    result_point = jnp.einsum('biyx,bipy->bipx', rot_ext, centered)
    result_point_norm = jnp.sqrt(jnp.sum(result_point ** 2, axis=-1) + DIST_EPS)
    result_point_flat = result_point.reshape(B * H, N, P_V * 3)
    attn_r = attn.reshape(B, H, N, N)
    result_attn_pair = jnp.einsum('bhij,bijc->bhic', attn_r, z).reshape(B * H, N, C_Z)

    result = jnp.concatenate(
        [result_scalar, result_point_flat, result_point_norm, result_attn_pair], axis=-1)
    result = result.reshape(B, H, N, -1).transpose(0, 2, 1, 3).reshape(B, N, -1)
    return result @ params['Wout'].T + params['bout']


# -----------------------------------------------------------------------------
# Main
# -----------------------------------------------------------------------------
if __name__ == "__main__":
    key = jax.random.PRNGKey(0)
    keys = jax.random.split(key, 16)

    def linear(k, fan_in, fan_out):
        kw, kb = jax.random.split(k)
        bound = 1.0 / math.sqrt(fan_in)
        W = jax.random.uniform(kw, (fan_out, fan_in), jnp.float32, -bound, bound)
        b = jax.random.uniform(kb, (fan_out,), jnp.float32, -bound, bound)
        return W, b

    params = {}
    params['Wsq'], params['bsq'] = linear(keys[0], C_S, H * D_QK)
    params['Wsk'], params['bsk'] = linear(keys[1], C_S, H * D_QK)
    params['Wsv'], params['bsv'] = linear(keys[2], C_S, H * D_V)
    params['Wsb'], params['bsb'] = linear(keys[3], C_Z, H)
    params['Wpq'], params['bpq'] = linear(keys[4], C_S, H * P_QK * 3)
    params['Wpk'], params['bpk'] = linear(keys[5], C_S, H * P_QK * 3)
    params['Wpv'], params['bpv'] = linear(keys[6], C_S, H * P_V * 3)
    params['Wattn'], params['battn'] = linear(keys[7], 3, 1)
    params['Wout'], params['bout'] = linear(keys[8], H * (D_V + P_V * 4 + C_Z), C_S)
    params['tpw'] = jnp.full((H,), math.log(math.e - 1.0), jnp.float32)  # softplus(tpw) == 1

    s = jax.random.normal(keys[9], (B, N, C_S), jnp.float32)
    z = jax.random.normal(keys[10], (B, N, N, C_Z), jnp.float32)
    tran = jax.random.normal(keys[11], (B, N, 3), jnp.float32)
    rot, _ = jnp.linalg.qr(jax.random.normal(keys[12], (B, N, 3, 3), jnp.float32))
    res_mask = jnp.ones((B, N), jnp.float32).at[1, -2:].set(0.0)

    out = jax.jit(ipa_forward_pallas)(params, s, z, rot, tran, res_mask)
    out = jax.block_until_ready(out)

    ref = ipa_forward_reference(params, s, z, rot, tran, res_mask)
    np.testing.assert_allclose(np.asarray(out), np.asarray(ref), rtol=5e-3, atol=5e-3)
    assert out.shape == (B, N, C_S)
    print("KERNEL_OK")
</pallas_src>

<mosaic_0001>
module attributes {stable_mosaic.version = 11 : i64} {
  func.func @_ipa_attn_kernel(%arg0: i32, %arg1: memref<11xf32, #tpu.memory_space<smem>>, %arg2: memref<1x4x8x16xf32, #tpu.memory_space<vmem>>, %arg3: memref<1x4x8x16xf32, #tpu.memory_space<vmem>>, %arg4: memref<1x4x8x16xf32, #tpu.memory_space<vmem>>, %arg5: memref<1x4x8x8xf32, #tpu.memory_space<vmem>>, %arg6: memref<1x4x8x12xf32, #tpu.memory_space<vmem>>, %arg7: memref<1x4x8x12xf32, #tpu.memory_space<vmem>>, %arg8: memref<1x4x8x12xf32, #tpu.memory_space<vmem>>, %arg9: memref<1x64x16xf32, #tpu.memory_space<vmem>>, %arg10: memref<1x8x8xf32, #tpu.memory_space<vmem>>, %arg11: memref<1x8x176xf32, #tpu.memory_space<vmem>>) attributes {dimension_semantics = [#tpu.dimension_semantics<parallel>], iteration_bounds = array<i64: 2>, scalar_prefetch = 1 : i64, scratch_operands = 0 : i64, tpu.core_type = #tpu.core_type<tc>, window_params = [{transform_indices = @transform_0, window_bounds = array<i64: 1, 4, 8, 16>}, {transform_indices = @transform_1, window_bounds = array<i64: 1, 4, 8, 16>}, {transform_indices = @transform_2, window_bounds = array<i64: 1, 4, 8, 16>}, {transform_indices = @transform_3, window_bounds = array<i64: 1, 4, 8, 8>}, {transform_indices = @transform_4, window_bounds = array<i64: 1, 4, 8, 12>}, {transform_indices = @transform_5, window_bounds = array<i64: 1, 4, 8, 12>}, {transform_indices = @transform_6, window_bounds = array<i64: 1, 4, 8, 12>}, {transform_indices = @transform_7, window_bounds = array<i64: 1, 64, 16>}, {transform_indices = @transform_8, window_bounds = array<i64: 1, 8, 8>}, {transform_indices = @transform_9, window_bounds = array<i64: 1, 8, 176>}]} {
    %c0 = arith.constant 0 : index
    %0 = memref.load %arg1[%c0] : memref<11xf32, #tpu.memory_space<smem>>
    %c1 = arith.constant 1 : index
    %1 = memref.load %arg1[%c1] : memref<11xf32, #tpu.memory_space<smem>>
    %c2 = arith.constant 2 : index
    %2 = memref.load %arg1[%c2] : memref<11xf32, #tpu.memory_space<smem>>
    %c0_0 = arith.constant 0 : index
    %c0_1 = arith.constant 0 : index
    %c0_2 = arith.constant 0 : index
    %3 = vector.load %arg10[%c0_0, %c0_1, %c0_2] : memref<1x8x8xf32, #tpu.memory_space<vmem>>, vector<1x8x8xf32>
    %4 = vector.shape_cast %3 : vector<1x8x8xf32> to vector<8x8xf32>
    %cst = arith.constant 0.000000e+00 : f32
    %5 = vector.broadcast %cst : f32 to vector<8x8xf32>
    %6 = arith.cmpf oeq, %4, %5 : vector<8x8xf32>
    %c0_3 = arith.constant 0 : index
    %c0_4 = arith.constant 0 : index
    %c0_5 = arith.constant 0 : index
    %7 = vector.load %arg9[%c0_3, %c0_4, %c0_5] : memref<1x64x16xf32, #tpu.memory_space<vmem>>, vector<1x64x16xf32>
    %8 = vector.shape_cast %7 : vector<1x64x16xf32> to vector<64x16xf32>
    %cst_6 = arith.constant 1.000000e+00 : f32
    %9 = vector.broadcast %cst_6 : f32 to vector<8x1xf32>
    %10 = tpu.iota {dimensions = array<i32: 0>} : vector<8x64xi32>
    %11 = tpu.iota {dimensions = array<i32: 1>} : vector<8x64xi32>
    %c8_i32 = arith.constant 8 : i32
    %12 = vector.broadcast %c8_i32 : i32 to vector<8x64xi32>
    %13 = arith.muli %10, %12 : vector<8x64xi32>
    %14 = arith.cmpi sge, %11, %13 : vector<8x64xi32>
    %c8_i32_7 = arith.constant 8 : i32
    %15 = vector.broadcast %c8_i32_7 : i32 to vector<8x64xi32>
    %16 = arith.addi %13, %15 : vector<8x64xi32>
    %17 = arith.cmpi slt, %11, %16 : vector<8x64xi32>
    %18 = arith.andi %14, %17 : vector<8x64xi1>
    %c3 = arith.constant 3 : index
    %19 = memref.load %arg1[%c3] : memref<11xf32, #tpu.memory_space<smem>>
    %c7 = arith.constant 7 : index
    %20 = memref.load %arg1[%c7] : memref<11xf32, #tpu.memory_space<smem>>
    %c0_8 = arith.constant 0 : index
    %c0_9 = arith.constant 0 : index
    %c0_10 = arith.constant 0 : index
    %c0_11 = arith.constant 0 : index
    %21 = vector.load %arg2[%c0_8, %c0_9, %c0_10, %c0_11] : memref<1x4x8x16xf32, #tpu.memory_space<vmem>>, vector<1x1x8x16xf32>
    %22 = vector.shape_cast %21 : vector<1x1x8x16xf32> to vector<8x16xf32>
    %c0_12 = arith.constant 0 : index
    %c0_13 = arith.constant 0 : index
    %c0_14 = arith.constant 0 : index
    %c0_15 = arith.constant 0 : index
    %23 = vector.load %arg3[%c0_12, %c0_13, %c0_14, %c0_15] : memref<1x4x8x16xf32, #tpu.memory_space<vmem>>, vector<1x1x8x16xf32>
    %24 = vector.shape_cast %23 : vector<1x1x8x16xf32> to vector<8x16xf32>
    %c0_16 = arith.constant 0 : index
    %c0_17 = arith.constant 0 : index
    %c0_18 = arith.constant 0 : index
    %c0_19 = arith.constant 0 : index
    %25 = vector.load %arg6[%c0_16, %c0_17, %c0_18, %c0_19] : memref<1x4x8x12xf32, #tpu.memory_space<vmem>>, vector<1x1x8x12xf32>
    %26 = vector.shape_cast %25 : vector<1x1x8x12xf32> to vector<8x12xf32>
    %c0_20 = arith.constant 0 : index
    %c0_21 = arith.constant 0 : index
    %c0_22 = arith.constant 0 : index
    %c0_23 = arith.constant 0 : index
    %27 = vector.load %arg7[%c0_20, %c0_21, %c0_22, %c0_23] : memref<1x4x8x12xf32, #tpu.memory_space<vmem>>, vector<1x1x8x12xf32>
    %28 = vector.shape_cast %27 : vector<1x1x8x12xf32> to vector<8x12xf32>
    %29 = arith.mulf %26, %26 : vector<8x12xf32>
    %cst_24 = arith.constant dense<0.000000e+00> : vector<8xf32>
    %30 = vector.multi_reduction <add>, %29, %cst_24 [1] : vector<8x12xf32> to vector<8xf32>
    %31 = vector.shape_cast %30 : vector<8xf32> to vector<8x1xf32>
    %32 = arith.mulf %28, %28 : vector<8x12xf32>
    %cst_25 = arith.constant dense<0.000000e+00> : vector<8xf32>
    %33 = vector.multi_reduction <add>, %32, %cst_25 [1] : vector<8x12xf32> to vector<8xf32>
    %34 = vector.shape_cast %33 : vector<8xf32> to vector<8x1xf32>
    %35 = vector.broadcast %0 : f32 to vector<8x16xf32>
    %36 = arith.mulf %35, %22 : vector<8x16xf32>
    %37 = vector.broadcast %20 : f32 to vector<8x12xf32>
    %38 = arith.mulf %37, %26 : vector<8x12xf32>
    %39 = vector.broadcast %19 : f32 to vector<8x1xf32>
    %40 = arith.mulf %39, %31 : vector<8x1xf32>
    %41 = vector.broadcast %19 : f32 to vector<8x1xf32>
    %42 = arith.mulf %41, %9 : vector<8x1xf32>
    %43 = tpu.concatenate %36, %38, %40, %42 in 1 : vector<8x16xf32>, vector<8x12xf32>, vector<8x1xf32>, vector<8x1xf32> -> vector<8x30xf32>
    %44 = tpu.concatenate %24, %28, %9, %34 in 1 : vector<8x16xf32>, vector<8x12xf32>, vector<8x1xf32>, vector<8x1xf32> -> vector<8x30xf32>
    %cst_26 = arith.constant dense<0.000000e+00> : vector<8x8xf32>
    %45 = tpu.matmul %43, %44, %cst_26 {dimension_numbers = #tpu.dot_dimension_numbers<[1], [1], [0], [0], [0, 0, 1, 0], [], []>} : vector<8x30xf32>, vector<8x30xf32>, vector<8x8xf32> -> vector<8x8xf32>
    %c0_27 = arith.constant 0 : index
    %c0_28 = arith.constant 0 : index
    %c0_29 = arith.constant 0 : index
    %c0_30 = arith.constant 0 : index
    %46 = vector.load %arg5[%c0_27, %c0_28, %c0_29, %c0_30] : memref<1x4x8x8xf32, #tpu.memory_space<vmem>>, vector<1x1x8x8xf32>
    %47 = vector.shape_cast %46 : vector<1x1x8x8xf32> to vector<8x8xf32>
    %48 = vector.broadcast %1 : f32 to vector<8x8xf32>
    %49 = arith.mulf %48, %47 : vector<8x8xf32>
    %50 = arith.addf %45, %49 : vector<8x8xf32>
    %51 = vector.broadcast %2 : f32 to vector<8x8xf32>
    %52 = arith.addf %50, %51 : vector<8x8xf32>
    %cst_31 = arith.constant -3.40282347E+38 : f32
    %53 = vector.broadcast %cst_31 : f32 to vector<8x8xf32>
    %54 = arith.select %6, %53, %52 : vector<8x8xi1>, vector<8x8xf32>
    %cst_32 = arith.constant dense<0xFF800000> : vector<8xf32>
    %55 = vector.multi_reduction <maximumf>, %54, %cst_32 [1] : vector<8x8xf32> to vector<8xf32>
    %56 = vector.shape_cast %55 : vector<8xf32> to vector<8x1xf32>
    %57 = vector.broadcast %56 : vector<8x1xf32> to vector<8x8xf32>
    %58 = arith.subf %54, %57 : vector<8x8xf32>
    %59 = math.exp %58 : vector<8x8xf32>
    %cst_33 = arith.constant dense<0.000000e+00> : vector<8xf32>
    %60 = vector.multi_reduction <add>, %59, %cst_33 [1] : vector<8x8xf32> to vector<8xf32>
    %61 = vector.shape_cast %60 : vector<8xf32> to vector<8x1xf32>
    %62 = tpu.reciprocal %61 {approx = true} : vector<8x1xf32> -> vector<8x1xf32>
    %63 = vector.broadcast %62 : vector<8x1xf32> to vector<8x8xf32>
    %64 = arith.mulf %59, %63 : vector<8x8xf32>
    %c0_34 = arith.constant 0 : index
    %c0_35 = arith.constant 0 : index
    %c0_36 = arith.constant 0 : index
    %c0_37 = arith.constant 0 : index
    %65 = vector.load %arg4[%c0_34, %c0_35, %c0_36, %c0_37] : memref<1x4x8x16xf32, #tpu.memory_space<vmem>>, vector<1x1x8x16xf32>
    %66 = vector.shape_cast %65 : vector<1x1x8x16xf32> to vector<8x16xf32>
    %c0_38 = arith.constant 0 : index
    %c0_39 = arith.constant 0 : index
    %c0_40 = arith.constant 0 : index
    %c0_41 = arith.constant 0 : index
    %67 = vector.load %arg8[%c0_38, %c0_39, %c0_40, %c0_41] : memref<1x4x8x12xf32, #tpu.memory_space<vmem>>, vector<1x1x8x12xf32>
    %68 = vector.shape_cast %67 : vector<1x1x8x12xf32> to vector<8x12xf32>
    %69 = tpu.concatenate %66, %68 in 1 : vector<8x16xf32>, vector<8x12xf32> -> vector<8x28xf32>
    %cst_42 = arith.constant dense<0.000000e+00> : vector<8x28xf32>
    %70 = tpu.matmul %64, %69, %cst_42 {dimension_numbers = #tpu.dot_dimension_numbers<[1], [0], [0], [1], [0, 0, 1, 1], [], []>} : vector<8x8xf32>, vector<8x28xf32>, vector<8x28xf32> -> vector<8x28xf32>
    %71 = tpu.concatenate %64, %64, %64, %64, %64, %64, %64, %64 in 1 : vector<8x8xf32>, vector<8x8xf32>, vector<8x8xf32>, vector<8x8xf32>, vector<8x8xf32>, vector<8x8xf32>, vector<8x8xf32>, vector<8x8xf32> -> vector<8x64xf32>
    %cst_43 = arith.constant 0.000000e+00 : f32
    %72 = vector.broadcast %cst_43 : f32 to vector<8x64xf32>
    %73 = arith.select %18, %71, %72 : vector<8x64xi1>, vector<8x64xf32>
    %cst_44 = arith.constant dense<0.000000e+00> : vector<8x16xf32>
    %74 = tpu.matmul %73, %8, %cst_44 {dimension_numbers = #tpu.dot_dimension_numbers<[1], [0], [0], [1], [0, 0, 1, 1], [], []>} : vector<8x64xf32>, vector<64x16xf32>, vector<8x16xf32> -> vector<8x16xf32>
    %c4 = arith.constant 4 : index
    %75 = memref.load %arg1[%c4] : memref<11xf32, #tpu.memory_space<smem>>
    %c8 = arith.constant 8 : index
    %76 = memref.load %arg1[%c8] : memref<11xf32, #tpu.memory_space<smem>>
    %c0_45 = arith.constant 0 : index
    %c1_46 = arith.constant 1 : index
    %c0_47 = arith.constant 0 : index
    %c0_48 = arith.constant 0 : index
    %77 = vector.load %arg2[%c0_45, %c1_46, %c0_47, %c0_48] : memref<1x4x8x16xf32, #tpu.memory_space<vmem>>, vector<1x1x8x16xf32>
    %78 = vector.shape_cast %77 : vector<1x1x8x16xf32> to vector<8x16xf32>
    %c0_49 = arith.constant 0 : index
    %c1_50 = arith.constant 1 : index
    %c0_51 = arith.constant 0 : index
    %c0_52 = arith.constant 0 : index
    %79 = vector.load %arg3[%c0_49, %c1_50, %c0_51, %c0_52] : memref<1x4x8x16xf32, #tpu.memory_space<vmem>>, vector<1x1x8x16xf32>
    %80 = vector.shape_cast %79 : vector<1x1x8x16xf32> to vector<8x16xf32>
    %c0_53 = arith.constant 0 : index
    %c1_54 = arith.constant 1 : index
    %c0_55 = arith.constant 0 : index
    %c0_56 = arith.constant 0 : index
    %81 = vector.load %arg6[%c0_53, %c1_54, %c0_55, %c0_56] : memref<1x4x8x12xf32, #tpu.memory_space<vmem>>, vector<1x1x8x12xf32>
    %82 = vector.shape_cast %81 : vector<1x1x8x12xf32> to vector<8x12xf32>
    %c0_57 = arith.constant 0 : index
    %c1_58 = arith.constant 1 : index
    %c0_59 = arith.constant 0 : index
    %c0_60 = arith.constant 0 : index
    %83 = vector.load %arg7[%c0_57, %c1_58, %c0_59, %c0_60] : memref<1x4x8x12xf32, #tpu.memory_space<vmem>>, vector<1x1x8x12xf32>
    %84 = vector.shape_cast %83 : vector<1x1x8x12xf32> to vector<8x12xf32>
    %85 = arith.mulf %82, %82 : vector<8x12xf32>
    %cst_61 = arith.constant dense<0.000000e+00> : vector<8xf32>
    %86 = vector.multi_reduction <add>, %85, %cst_61 [1] : vector<8x12xf32> to vector<8xf32>
    %87 = vector.shape_cast %86 : vector<8xf32> to vector<8x1xf32>
    %88 = arith.mulf %84, %84 : vector<8x12xf32>
    %cst_62 = arith.constant dense<0.000000e+00> : vector<8xf32>
    %89 = vector.multi_reduction <add>, %88, %cst_62 [1] : vector<8x12xf32> to vector<8xf32>
    %90 = vector.shape_cast %89 : vector<8xf32> to vector<8x1xf32>
    %91 = vector.broadcast %0 : f32 to vector<8x16xf32>
    %92 = arith.mulf %91, %78 : vector<8x16xf32>
    %93 = vector.broadcast %76 : f32 to vector<8x12xf32>
    %94 = arith.mulf %93, %82 : vector<8x12xf32>
    %95 = vector.broadcast %75 : f32 to vector<8x1xf32>
    %96 = arith.mulf %95, %87 : vector<8x1xf32>
    %97 = vector.broadcast %75 : f32 to vector<8x1xf32>
    %98 = arith.mulf %97, %9 : vector<8x1xf32>
    %99 = tpu.concatenate %92, %94, %96, %98 in 1 : vector<8x16xf32>, vector<8x12xf32>, vector<8x1xf32>, vector<8x1xf32> -> vector<8x30xf32>
    %100 = tpu.concatenate %80, %84, %9, %90 in 1 : vector<8x16xf32>, vector<8x12xf32>, vector<8x1xf32>, vector<8x1xf32> -> vector<8x30xf32>
    %cst_63 = arith.constant dense<0.000000e+00> : vector<8x8xf32>
    %101 = tpu.matmul %99, %100, %cst_63 {dimension_numbers = #tpu.dot_dimension_numbers<[1], [1], [0], [0], [0, 0, 1, 0], [], []>} : vector<8x30xf32>, vector<8x30xf32>, vector<8x8xf32> -> vector<8x8xf32>
    %c0_64 = arith.constant 0 : index
    %c1_65 = arith.constant 1 : index
    %c0_66 = arith.constant 0 : index
    %c0_67 = arith.constant 0 : index
    %102 = vector.load %arg5[%c0_64, %c1_65, %c0_66, %c0_67] : memref<1x4x8x8xf32, #tpu.memory_space<vmem>>, vector<1x1x8x8xf32>
    %103 = vector.shape_cast %102 : vector<1x1x8x8xf32> to vector<8x8xf32>
    %104 = vector.broadcast %1 : f32 to vector<8x8xf32>
    %105 = arith.mulf %104, %103 : vector<8x8xf32>
    %106 = arith.addf %101, %105 : vector<8x8xf32>
    %107 = vector.broadcast %2 : f32 to vector<8x8xf32>
    %108 = arith.addf %106, %107 : vector<8x8xf32>
    %cst_68 = arith.constant -3.40282347E+38 : f32
    %109 = vector.broadcast %cst_68 : f32 to vector<8x8xf32>
    %110 = arith.select %6, %109, %108 : vector<8x8xi1>, vector<8x8xf32>
    %cst_69 = arith.constant dense<0xFF800000> : vector<8xf32>
    %111 = vector.multi_reduction <maximumf>, %110, %cst_69 [1] : vector<8x8xf32> to vector<8xf32>
    %112 = vector.shape_cast %111 : vector<8xf32> to vector<8x1xf32>
    %113 = vector.broadcast %112 : vector<8x1xf32> to vector<8x8xf32>
    %114 = arith.subf %110, %113 : vector<8x8xf32>
    %115 = math.exp %114 : vector<8x8xf32>
    %cst_70 = arith.constant dense<0.000000e+00> : vector<8xf32>
    %116 = vector.multi_reduction <add>, %115, %cst_70 [1] : vector<8x8xf32> to vector<8xf32>
    %117 = vector.shape_cast %116 : vector<8xf32> to vector<8x1xf32>
    %118 = tpu.reciprocal %117 {approx = true} : vector<8x1xf32> -> vector<8x1xf32>
    %119 = vector.broadcast %118 : vector<8x1xf32> to vector<8x8xf32>
    %120 = arith.mulf %115, %119 : vector<8x8xf32>
    %c0_71 = arith.constant 0 : index
    %c1_72 = arith.constant 1 : index
    %c0_73 = arith.constant 0 : index
    %c0_74 = arith.constant 0 : index
    %121 = vector.load %arg4[%c0_71, %c1_72, %c0_73, %c0_74] : memref<1x4x8x16xf32, #tpu.memory_space<vmem>>, vector<1x1x8x16xf32>
    %122 = vector.shape_cast %121 : vector<1x1x8x16xf32> to vector<8x16xf32>
    %c0_75 = arith.constant 0 : index
    %c1_76 = arith.constant 1 : index
    %c0_77 = arith.constant 0 : index
    %c0_78 = arith.constant 0 : index
    %123 = vector.load %arg8[%c0_75, %c1_76, %c0_77, %c0_78] : memref<1x4x8x12xf32, #tpu.memory_space<vmem>>, vector<1x1x8x12xf32>
    %124 = vector.shape_cast %123 : vector<1x1x8x12xf32> to vector<8x12xf32>
    %125 = tpu.concatenate %122, %124 in 1 : vector<8x16xf32>, vector<8x12xf32> -> vector<8x28xf32>
    %cst_79 = arith.constant dense<0.000000e+00> : vector<8x28xf32>
    %126 = tpu.matmul %120, %125, %cst_79 {dimension_numbers = #tpu.dot_dimension_numbers<[1], [0], [0], [1], [0, 0, 1, 1], [], []>} : vector<8x8xf32>, vector<8x28xf32>, vector<8x28xf32> -> vector<8x28xf32>
    %127 = tpu.concatenate %120, %120, %120, %120, %120, %120, %120, %120 in 1 : vector<8x8xf32>, vector<8x8xf32>, vector<8x8xf32>, vector<8x8xf32>, vector<8x8xf32>, vector<8x8xf32>, vector<8x8xf32>, vector<8x8xf32> -> vector<8x64xf32>
    %cst_80 = arith.constant 0.000000e+00 : f32
    %128 = vector.broadcast %cst_80 : f32 to vector<8x64xf32>
    %129 = arith.select %18, %127, %128 : vector<8x64xi1>, vector<8x64xf32>
    %cst_81 = arith.constant dense<0.000000e+00> : vector<8x16xf32>
    %130 = tpu.matmul %129, %8, %cst_81 {dimension_numbers = #tpu.dot_dimension_numbers<[1], [0], [0], [1], [0, 0, 1, 1], [], []>} : vector<8x64xf32>, vector<64x16xf32>, vector<8x16xf32> -> vector<8x16xf32>
    %c5 = arith.constant 5 : index
    %131 = memref.load %arg1[%c5] : memref<11xf32, #tpu.memory_space<smem>>
    %c9 = arith.constant 9 : index
    %132 = memref.load %arg1[%c9] : memref<11xf32, #tpu.memory_space<smem>>
    %c0_82 = arith.constant 0 : index
    %c2_83 = arith.constant 2 : index
    %c0_84 = arith.constant 0 : index
    %c0_85 = arith.constant 0 : index
    %133 = vector.load %arg2[%c0_82, %c2_83, %c0_84, %c0_85] : memref<1x4x8x16xf32, #tpu.memory_space<vmem>>, vector<1x1x8x16xf32>
    %134 = vector.shape_cast %133 : vector<1x1x8x16xf32> to vector<8x16xf32>
    %c0_86 = arith.constant 0 : index
    %c2_87 = arith.constant 2 : index
    %c0_88 = arith.constant 0 : index
    %c0_89 = arith.constant 0 : index
    %135 = vector.load %arg3[%c0_86, %c2_87, %c0_88, %c0_89] : memref<1x4x8x16xf32, #tpu.memory_space<vmem>>, vector<1x1x8x16xf32>
    %136 = vector.shape_cast %135 : vector<1x1x8x16xf32> to vector<8x16xf32>
    %c0_90 = arith.constant 0 : index
    %c2_91 = arith.constant 2 : index
    %c0_92 = arith.constant 0 : index
    %c0_93 = arith.constant 0 : index
    %137 = vector.load %arg6[%c0_90, %c2_91, %c0_92, %c0_93] : memref<1x4x8x12xf32, #tpu.memory_space<vmem>>, vector<1x1x8x12xf32>
    %138 = vector.shape_cast %137 : vector<1x1x8x12xf32> to vector<8x12xf32>
    %c0_94 = arith.constant 0 : index
    %c2_95 = arith.constant 2 : index
    %c0_96 = arith.constant 0 : index
    %c0_97 = arith.constant 0 : index
    %139 = vector.load %arg7[%c0_94, %c2_95, %c0_96, %c0_97] : memref<1x4x8x12xf32, #tpu.memory_space<vmem>>, vector<1x1x8x12xf32>
    %140 = vector.shape_cast %139 : vector<1x1x8x12xf32> to vector<8x12xf32>
    %141 = arith.mulf %138, %138 : vector<8x12xf32>
    %cst_98 = arith.constant dense<0.000000e+00> : vector<8xf32>
    %142 = vector.multi_reduction <add>, %141, %cst_98 [1] : vector<8x12xf32> to vector<8xf32>
    %143 = vector.shape_cast %142 : vector<8xf32> to vector<8x1xf32>
    %144 = arith.mulf %140, %140 : vector<8x12xf32>
    %cst_99 = arith.constant dense<0.000000e+00> : vector<8xf32>
    %145 = vector.multi_reduction <add>, %144, %cst_99 [1] : vector<8x12xf32> to vector<8xf32>
    %146 = vector.shape_cast %145 : vector<8xf32> to vector<8x1xf32>
    %147 = vector.broadcast %0 : f32 to vector<8x16xf32>
    %148 = arith.mulf %147, %134 : vector<8x16xf32>
    %149 = vector.broadcast %132 : f32 to vector<8x12xf32>
    %150 = arith.mulf %149, %138 : vector<8x12xf32>
    %151 = vector.broadcast %131 : f32 to vector<8x1xf32>
    %152 = arith.mulf %151, %143 : vector<8x1xf32>
    %153 = vector.broadcast %131 : f32 to vector<8x1xf32>
    %154 = arith.mulf %153, %9 : vector<8x1xf32>
    %155 = tpu.concatenate %148, %150, %152, %154 in 1 : vector<8x16xf32>, vector<8x12xf32>, vector<8x1xf32>, vector<8x1xf32> -> vector<8x30xf32>
    %156 = tpu.concatenate %136, %140, %9, %146 in 1 : vector<8x16xf32>, vector<8x12xf32>, vector<8x1xf32>, vector<8x1xf32> -> vector<8x30xf32>
    %cst_100 = arith.constant dense<0.000000e+00> : vector<8x8xf32>
    %157 = tpu.matmul %155, %156, %cst_100 {dimension_numbers = #tpu.dot_dimension_numbers<[1], [1], [0], [0], [0, 0, 1, 0], [], []>} : vector<8x30xf32>, vector<8x30xf32>, vector<8x8xf32> -> vector<8x8xf32>
    %c0_101 = arith.constant 0 : index
    %c2_102 = arith.constant 2 : index
    %c0_103 = arith.constant 0 : index
    %c0_104 = arith.constant 0 : index
    %158 = vector.load %arg5[%c0_101, %c2_102, %c0_103, %c0_104] : memref<1x4x8x8xf32, #tpu.memory_space<vmem>>, vector<1x1x8x8xf32>
    %159 = vector.shape_cast %158 : vector<1x1x8x8xf32> to vector<8x8xf32>
    %160 = vector.broadcast %1 : f32 to vector<8x8xf32>
    %161 = arith.mulf %160, %159 : vector<8x8xf32>
    %162 = arith.addf %157, %161 : vector<8x8xf32>
    %163 = vector.broadcast %2 : f32 to vector<8x8xf32>
    %164 = arith.addf %162, %163 : vector<8x8xf32>
    %cst_105 = arith.constant -3.40282347E+38 : f32
    %165 = vector.broadcast %cst_105 : f32 to vector<8x8xf32>
    %166 = arith.select %6, %165, %164 : vector<8x8xi1>, vector<8x8xf32>
    %cst_106 = arith.constant dense<0xFF800000> : vector<8xf32>
    %167 = vector.multi_reduction <maximumf>, %166, %cst_106 [1] : vector<8x8xf32> to vector<8xf32>
    %168 = vector.shape_cast %167 : vector<8xf32> to vector<8x1xf32>
    %169 = vector.broadcast %168 : vector<8x1xf32> to vector<8x8xf32>
    %170 = arith.subf %166, %169 : vector<8x8xf32>
    %171 = math.exp %170 : vector<8x8xf32>
    %cst_107 = arith.constant dense<0.000000e+00> : vector<8xf32>
    %172 = vector.multi_reduction <add>, %171, %cst_107 [1] : vector<8x8xf32> to vector<8xf32>
    %173 = vector.shape_cast %172 : vector<8xf32> to vector<8x1xf32>
    %174 = tpu.reciprocal %173 {approx = true} : vector<8x1xf32> -> vector<8x1xf32>
    %175 = vector.broadcast %174 : vector<8x1xf32> to vector<8x8xf32>
    %176 = arith.mulf %171, %175 : vector<8x8xf32>
    %c0_108 = arith.constant 0 : index
    %c2_109 = arith.constant 2 : index
    %c0_110 = arith.constant 0 : index
    %c0_111 = arith.constant 0 : index
    %177 = vector.load %arg4[%c0_108, %c2_109, %c0_110, %c0_111] : memref<1x4x8x16xf32, #tpu.memory_space<vmem>>, vector<1x1x8x16xf32>
    %178 = vector.shape_cast %177 : vector<1x1x8x16xf32> to vector<8x16xf32>
    %c0_112 = arith.constant 0 : index
    %c2_113 = arith.constant 2 : index
    %c0_114 = arith.constant 0 : index
    %c0_115 = arith.constant 0 : index
    %179 = vector.load %arg8[%c0_112, %c2_113, %c0_114, %c0_115] : memref<1x4x8x12xf32, #tpu.memory_space<vmem>>, vector<1x1x8x12xf32>
    %180 = vector.shape_cast %179 : vector<1x1x8x12xf32> to vector<8x12xf32>
    %181 = tpu.concatenate %178, %180 in 1 : vector<8x16xf32>, vector<8x12xf32> -> vector<8x28xf32>
    %cst_116 = arith.constant dense<0.000000e+00> : vector<8x28xf32>
    %182 = tpu.matmul %176, %181, %cst_116 {dimension_numbers = #tpu.dot_dimension_numbers<[1], [0], [0], [1], [0, 0, 1, 1], [], []>} : vector<8x8xf32>, vector<8x28xf32>, vector<8x28xf32> -> vector<8x28xf32>
    %183 = tpu.concatenate %176, %176, %176, %176, %176, %176, %176, %176 in 1 : vector<8x8xf32>, vector<8x8xf32>, vector<8x8xf32>, vector<8x8xf32>, vector<8x8xf32>, vector<8x8xf32>, vector<8x8xf32>, vector<8x8xf32> -> vector<8x64xf32>
    %cst_117 = arith.constant 0.000000e+00 : f32
    %184 = vector.broadcast %cst_117 : f32 to vector<8x64xf32>
    %185 = arith.select %18, %183, %184 : vector<8x64xi1>, vector<8x64xf32>
    %cst_118 = arith.constant dense<0.000000e+00> : vector<8x16xf32>
    %186 = tpu.matmul %185, %8, %cst_118 {dimension_numbers = #tpu.dot_dimension_numbers<[1], [0], [0], [1], [0, 0, 1, 1], [], []>} : vector<8x64xf32>, vector<64x16xf32>, vector<8x16xf32> -> vector<8x16xf32>
    %c6 = arith.constant 6 : index
    %187 = memref.load %arg1[%c6] : memref<11xf32, #tpu.memory_space<smem>>
    %c10 = arith.constant 10 : index
    %188 = memref.load %arg1[%c10] : memref<11xf32, #tpu.memory_space<smem>>
    %c0_119 = arith.constant 0 : index
    %c3_120 = arith.constant 3 : index
    %c0_121 = arith.constant 0 : index
    %c0_122 = arith.constant 0 : index
    %189 = vector.load %arg2[%c0_119, %c3_120, %c0_121, %c0_122] : memref<1x4x8x16xf32, #tpu.memory_space<vmem>>, vector<1x1x8x16xf32>
    %190 = vector.shape_cast %189 : vector<1x1x8x16xf32> to vector<8x16xf32>
    %c0_123 = arith.constant 0 : index
    %c3_124 = arith.constant 3 : index
    %c0_125 = arith.constant 0 : index
    %c0_126 = arith.constant 0 : index
    %191 = vector.load %arg3[%c0_123, %c3_124, %c0_125, %c0_126] : memref<1x4x8x16xf32, #tpu.memory_space<vmem>>, vector<1x1x8x16xf32>
    %192 = vector.shape_cast %191 : vector<1x1x8x16xf32> to vector<8x16xf32>
    %c0_127 = arith.constant 0 : index
    %c3_128 = arith.constant 3 : index
    %c0_129 = arith.constant 0 : index
    %c0_130 = arith.constant 0 : index
    %193 = vector.load %arg6[%c0_127, %c3_128, %c0_129, %c0_130] : memref<1x4x8x12xf32, #tpu.memory_space<vmem>>, vector<1x1x8x12xf32>
    %194 = vector.shape_cast %193 : vector<1x1x8x12xf32> to vector<8x12xf32>
    %c0_131 = arith.constant 0 : index
    %c3_132 = arith.constant 3 : index
    %c0_133 = arith.constant 0 : index
    %c0_134 = arith.constant 0 : index
    %195 = vector.load %arg7[%c0_131, %c3_132, %c0_133, %c0_134] : memref<1x4x8x12xf32, #tpu.memory_space<vmem>>, vector<1x1x8x12xf32>
    %196 = vector.shape_cast %195 : vector<1x1x8x12xf32> to vector<8x12xf32>
    %197 = arith.mulf %194, %194 : vector<8x12xf32>
    %cst_135 = arith.constant dense<0.000000e+00> : vector<8xf32>
    %198 = vector.multi_reduction <add>, %197, %cst_135 [1] : vector<8x12xf32> to vector<8xf32>
    %199 = vector.shape_cast %198 : vector<8xf32> to vector<8x1xf32>
    %200 = arith.mulf %196, %196 : vector<8x12xf32>
    %cst_136 = arith.constant dense<0.000000e+00> : vector<8xf32>
    %201 = vector.multi_reduction <add>, %200, %cst_136 [1] : vector<8x12xf32> to vector<8xf32>
    %202 = vector.shape_cast %201 : vector<8xf32> to vector<8x1xf32>
    %203 = vector.broadcast %0 : f32 to vector<8x16xf32>
    %204 = arith.mulf %203, %190 : vector<8x16xf32>
    %205 = vector.broadcast %188 : f32 to vector<8x12xf32>
    %206 = arith.mulf %205, %194 : vector<8x12xf32>
    %207 = vector.broadcast %187 : f32 to vector<8x1xf32>
    %208 = arith.mulf %207, %199 : vector<8x1xf32>
    %209 = vector.broadcast %187 : f32 to vector<8x1xf32>
    %210 = arith.mulf %209, %9 : vector<8x1xf32>
    %211 = tpu.concatenate %204, %206, %208, %210 in 1 : vector<8x16xf32>, vector<8x12xf32>, vector<8x1xf32>, vector<8x1xf32> -> vector<8x30xf32>
    %212 = tpu.concatenate %192, %196, %9, %202 in 1 : vector<8x16xf32>, vector<8x12xf32>, vector<8x1xf32>, vector<8x1xf32> -> vector<8x30xf32>
    %cst_137 = arith.constant dense<0.000000e+00> : vector<8x8xf32>
    %213 = tpu.matmul %211, %212, %cst_137 {dimension_numbers = #tpu.dot_dimension_numbers<[1], [1], [0], [0], [0, 0, 1, 0], [], []>} : vector<8x30xf32>, vector<8x30xf32>, vector<8x8xf32> -> vector<8x8xf32>
    %c0_138 = arith.constant 0 : index
    %c3_139 = arith.constant 3 : index
    %c0_140 = arith.constant 0 : index
    %c0_141 = arith.constant 0 : index
    %214 = vector.load %arg5[%c0_138, %c3_139, %c0_140, %c0_141] : memref<1x4x8x8xf32, #tpu.memory_space<vmem>>, vector<1x1x8x8xf32>
    %215 = vector.shape_cast %214 : vector<1x1x8x8xf32> to vector<8x8xf32>
    %216 = vector.broadcast %1 : f32 to vector<8x8xf32>
    %217 = arith.mulf %216, %215 : vector<8x8xf32>
    %218 = arith.addf %213, %217 : vector<8x8xf32>
    %219 = vector.broadcast %2 : f32 to vector<8x8xf32>
    %220 = arith.addf %218, %219 : vector<8x8xf32>
    %cst_142 = arith.constant -3.40282347E+38 : f32
    %221 = vector.broadcast %cst_142 : f32 to vector<8x8xf32>
    %222 = arith.select %6, %221, %220 : vector<8x8xi1>, vector<8x8xf32>
    %cst_143 = arith.constant dense<0xFF800000> : vector<8xf32>
    %223 = vector.multi_reduction <maximumf>, %222, %cst_143 [1] : vector<8x8xf32> to vector<8xf32>
    %224 = vector.shape_cast %223 : vector<8xf32> to vector<8x1xf32>
    %225 = vector.broadcast %224 : vector<8x1xf32> to vector<8x8xf32>
    %226 = arith.subf %222, %225 : vector<8x8xf32>
    %227 = math.exp %226 : vector<8x8xf32>
    %cst_144 = arith.constant dense<0.000000e+00> : vector<8xf32>
    %228 = vector.multi_reduction <add>, %227, %cst_144 [1] : vector<8x8xf32> to vector<8xf32>
    %229 = vector.shape_cast %228 : vector<8xf32> to vector<8x1xf32>
    %230 = tpu.reciprocal %229 {approx = true} : vector<8x1xf32> -> vector<8x1xf32>
    %231 = vector.broadcast %230 : vector<8x1xf32> to vector<8x8xf32>
    %232 = arith.mulf %227, %231 : vector<8x8xf32>
    %c0_145 = arith.constant 0 : index
    %c3_146 = arith.constant 3 : index
    %c0_147 = arith.constant 0 : index
    %c0_148 = arith.constant 0 : index
    %233 = vector.load %arg4[%c0_145, %c3_146, %c0_147, %c0_148] : memref<1x4x8x16xf32, #tpu.memory_space<vmem>>, vector<1x1x8x16xf32>
    %234 = vector.shape_cast %233 : vector<1x1x8x16xf32> to vector<8x16xf32>
    %c0_149 = arith.constant 0 : index
    %c3_150 = arith.constant 3 : index
    %c0_151 = arith.constant 0 : index
    %c0_152 = arith.constant 0 : index
    %235 = vector.load %arg8[%c0_149, %c3_150, %c0_151, %c0_152] : memref<1x4x8x12xf32, #tpu.memory_space<vmem>>, vector<1x1x8x12xf32>
    %236 = vector.shape_cast %235 : vector<1x1x8x12xf32> to vector<8x12xf32>
    %237 = tpu.concatenate %234, %236 in 1 : vector<8x16xf32>, vector<8x12xf32> -> vector<8x28xf32>
    %cst_153 = arith.constant dense<0.000000e+00> : vector<8x28xf32>
    %238 = tpu.matmul %232, %237, %cst_153 {dimension_numbers = #tpu.dot_dimension_numbers<[1], [0], [0], [1], [0, 0, 1, 1], [], []>} : vector<8x8xf32>, vector<8x28xf32>, vector<8x28xf32> -> vector<8x28xf32>
    %239 = tpu.concatenate %232, %232, %232, %232, %232, %232, %232, %232 in 1 : vector<8x8xf32>, vector<8x8xf32>, vector<8x8xf32>, vector<8x8xf32>, vector<8x8xf32>, vector<8x8xf32>, vector<8x8xf32>, vector<8x8xf32> -> vector<8x64xf32>
    %cst_154 = arith.constant 0.000000e+00 : f32
    %240 = vector.broadcast %cst_154 : f32 to vector<8x64xf32>
    %241 = arith.select %18, %239, %240 : vector<8x64xi1>, vector<8x64xf32>
    %cst_155 = arith.constant dense<0.000000e+00> : vector<8x16xf32>
    %242 = tpu.matmul %241, %8, %cst_155 {dimension_numbers = #tpu.dot_dimension_numbers<[1], [0], [0], [1], [0, 0, 1, 1], [], []>} : vector<8x64xf32>, vector<64x16xf32>, vector<8x16xf32> -> vector<8x16xf32>
    %243 = tpu.concatenate %70, %74, %126, %130, %182, %186, %238, %242 in 1 : vector<8x28xf32>, vector<8x16xf32>, vector<8x28xf32>, vector<8x16xf32>, vector<8x28xf32>, vector<8x16xf32>, vector<8x28xf32>, vector<8x16xf32> -> vector<8x176xf32>
    %c0_156 = arith.constant 0 : index
    %c0_157 = arith.constant 0 : index
    %c0_158 = arith.constant 0 : index
    %244 = vector.load %arg11[%c0_156, %c0_157, %c0_158] : memref<1x8x176xf32, #tpu.memory_space<vmem>>, vector<1x8x176xf32>
    %245 = vector.shape_cast %244 : vector<1x8x176xf32> to vector<8x176xf32>
    %246 = vector.shape_cast %243 : vector<8x176xf32> to vector<1x8x176xf32>
    tpu.vector_store %arg11[%c0_156, %c0_157, %c0_158], %246 {strides = array<i32>} : memref<1x8x176xf32, #tpu.memory_space<vmem>>, vector<1x8x176xf32>,
    return
  }
  func.func @transform_0(%arg0: i32, %arg1: memref<11xf32, #tpu.memory_space<smem>>) -> (i32, i32, i32, i32) {
    %c0_i32 = arith.constant 0 : i32
    %c0_i32_0 = arith.constant 0 : i32
    %c0_i32_1 = arith.constant 0 : i32
    %c0_i32_2 = arith.constant 0 : i32
    return %arg0, %c0_i32, %c0_i32_0, %c0_i32_1 : i32, i32, i32, i32
  }
  func.func @transform_1(%arg0: i32, %arg1: memref<11xf32, #tpu.memory_space<smem>>) -> (i32, i32, i32, i32) {
    %c0_i32 = arith.constant 0 : i32
    %c0_i32_0 = arith.constant 0 : i32
    %c0_i32_1 = arith.constant 0 : i32
    %c0_i32_2 = arith.constant 0 : i32
    return %arg0, %c0_i32, %c0_i32_0, %c0_i32_1 : i32, i32, i32, i32
  }
  func.func @transform_2(%arg0: i32, %arg1: memref<11xf32, #tpu.memory_space<smem>>) -> (i32, i32, i32, i32) {
    %c0_i32 = arith.constant 0 : i32
    %c0_i32_0 = arith.constant 0 : i32
    %c0_i32_1 = arith.constant 0 : i32
    %c0_i32_2 = arith.constant 0 : i32
    return %arg0, %c0_i32, %c0_i32_0, %c0_i32_1 : i32, i32, i32, i32
  }
  func.func @transform_3(%arg0: i32, %arg1: memref<11xf32, #tpu.memory_space<smem>>) -> (i32, i32, i32, i32) {
    %c0_i32 = arith.constant 0 : i32
    %c0_i32_0 = arith.constant 0 : i32
    %c0_i32_1 = arith.constant 0 : i32
    %c0_i32_2 = arith.constant 0 : i32
    return %arg0, %c0_i32, %c0_i32_0, %c0_i32_1 : i32, i32, i32, i32
  }
  func.func @transform_4(%arg0: i32, %arg1: memref<11xf32, #tpu.memory_space<smem>>) -> (i32, i32, i32, i32) {
    %c0_i32 = arith.constant 0 : i32
    %c0_i32_0 = arith.constant 0 : i32
    %c0_i32_1 = arith.constant 0 : i32
    %c0_i32_2 = arith.constant 0 : i32
    return %arg0, %c0_i32, %c0_i32_0, %c0_i32_1 : i32, i32, i32, i32
  }
  func.func @transform_5(%arg0: i32, %arg1: memref<11xf32, #tpu.memory_space<smem>>) -> (i32, i32, i32, i32) {
    %c0_i32 = arith.constant 0 : i32
    %c0_i32_0 = arith.constant 0 : i32
    %c0_i32_1 = arith.constant 0 : i32
    %c0_i32_2 = arith.constant 0 : i32
    return %arg0, %c0_i32, %c0_i32_0, %c0_i32_1 : i32, i32, i32, i32
  }
  func.func @transform_6(%arg0: i32, %arg1: memref<11xf32, #tpu.memory_space<smem>>) -> (i32, i32, i32, i32) {
    %c0_i32 = arith.constant 0 : i32
    %c0_i32_0 = arith.constant 0 : i32
    %c0_i32_1 = arith.constant 0 : i32
    %c0_i32_2 = arith.constant 0 : i32
    return %arg0, %c0_i32, %c0_i32_0, %c0_i32_1 : i32, i32, i32, i32
  }
  func.func @transform_7(%arg0: i32, %arg1: memref<11xf32, #tpu.memory_space<smem>>) -> (i32, i32, i32) {
    %c0_i32 = arith.constant 0 : i32
    %c0_i32_0 = arith.constant 0 : i32
    %c0_i32_1 = arith.constant 0 : i32
    return %arg0, %c0_i32, %c0_i32_0 : i32, i32, i32
  }
  func.func @transform_8(%arg0: i32, %arg1: memref<11xf32, #tpu.memory_space<smem>>) -> (i32, i32, i32) {
    %c0_i32 = arith.constant 0 : i32
    %c0_i32_0 = arith.constant 0 : i32
    %c0_i32_1 = arith.constant 0 : i32
    return %arg0, %c0_i32, %c0_i32_0 : i32, i32, i32
  }
  func.func @transform_9(%arg0: i32, %arg1: memref<11xf32, #tpu.memory_space<smem>>) -> (i32, i32, i32) {
    %c0_i32 = arith.constant 0 : i32
    %c0_i32_0 = arith.constant 0 : i32
    %c0_i32_1 = arith.constant 0 : i32
    return %arg0, %c0_i32, %c0_i32_0 : i32, i32, i32
  }
}

</mosaic_0001>

<bundles_post_ra>
// kernel: ipa_forward_pallas.1
= control target key start
LH: loop header
LB: loop body
LE: loop exit
PB: predicated region body
PF: predicated region fallthrough
CT: control target
= control target key end

     0   :  { %s2836_s0 = inlined_call_operand.vmem [shape: f32[11], index: 0, kind: input, shape index: {}]   ;;  %s2837_s1 = inlined_call_operand.vmem [shape: f32[2,4,8,16], index: 1, kind: input, shape index: {}]   ;;  %s2838_s2 = inlined_call_operand.vmem [shape: f32[2,4,8,16], index: 2, kind: input, shape index: {}]   ;;  %s2839_s3 = inlined_call_operand.vmem [shape: f32[2,4,8,16], index: 3, kind: input, shape index: {}]   ;;  %s2840_s4 = inlined_call_operand.vmem [shape: f32[2,4,8,8], index: 4, kind: input, shape index: {}]   ;;  %s2841_s5 = inlined_call_operand.vmem [shape: f32[2,4,8,12], index: 5, kind: input, shape index: {}]   ;;  %s2842_s6 = inlined_call_operand.vmem [shape: f32[2,4,8,12], index: 6, kind: input, shape index: {}]   ;;  %s2843_s7 = inlined_call_operand.vmem [shape: f32[2,4,8,12], index: 7, kind: input, shape index: {}]   ;;  %s2844_s8 = inlined_call_operand.vmem [shape: f32[2,64,16], index: 8, kind: input, shape index: {}]   ;;  %s2845_s9 = inlined_call_operand.vmem [shape: f32[2,8,8], index: 9, kind: input, shape index: {}]   ;;  %s2846_s10 = inlined_call_operand.vmem [shape: f32[2,8,176], index: 10, kind: output, shape index: {}]  }
   0x1   :  { %s15_s15 = sshll.u32 %s2836_s0, 4  ;;  %s16_s15 = int_to_ptr.vmem [resolvable:$true] %s15_s15 }
   0x2   :  { %s2311_s16 = scalar_lea.vmem %s16_s15, 16  ;;  %p2316_p1 = scmp.lt.s32.totalorder %s16_s15, %s16_s15 }
   0x3   :  { %p2312_p0 = scmp.ne.s32.totalorder %s16_s15, %s2311_s16  ;;  %p2317_p2 = scmp.lt.s32.totalorder %s2311_s16, %s2311_s16 }
   0x5   :  { %p2318_p3 = por %p2317_p2, %p2316_p1 }
   0x7   :  { %p2319_p4 = pnand %p2318_p3, %p2312_p0 }
   0x9   :  { %2322 = shalt.err (!%p2319_p4)  }
   0xa   :  { %s2333_s17 = smov [#allocation3]  }
   0xb   :  { %18 = dma.vmem_to_smem %s16_s15, 16, %s2333_s17, [#allocation2] }
   0xc   :  { %2327 = dma.done.wait [#allocation2], 16 }
   0xd   :  { %2328 = vsyncadd [#allocation2], 4294967280 }
   0xe   :  { %20 = sfence }
   0xf   :  { %s2408_s18 = smov 0  }
  0x10 LB: > { %s1972_s0 = sadd.s32 4294967295, %s2331_s18   ;;  %p1976_p5 = scmp.ge.s32.totalorder %s2331_s18, 1  ;;  %s2331_s18 = sphi %s2408_s18, %s26_s18  }
  0x11   : > { %p373_p6 = scmp.lt.s32.totalorder %s2331_s18, 3 }
  0x13   : > { %p374_p7 = pnand %p1976_p5, %p373_p6 }
  0x14   : > { %p448_p8 = scmp.lt.s32.totalorder (!%p374_p7), %s1972_s0, 1  ;;  %vm526_vm0 = vcmask (!%p374_p7), 97280   ;;  %s1999_s26 = sld [smem:[#allocation3 + $0x7]] (!%p374_p7)  ;;  %v2335_v15 = vmov (!%p374_p7), 0.0   ;;  %vm2336_vm1 = vmmov (!%p374_p7), 0   ;;  %vm544_vm2 = vcmask (!%p374_p7), 130048  }
  0x15   : > { %377 = sbr.rel (%p374_p7) target bundleno = 1874 (0x752), region = 56  ;;  %s2005_s27 = sld [smem:[#allocation3 + $0x8]] (!%p374_p7)  ;;  %2106 = vmatprep.subr.mxu1 (!%p374_p7), %v2335_v15  ;;  %2135 = vmatprep.subr.mxu0 (!%p374_p7), %v2335_v15  ;;  %vm546_vm3 = vcmask (!%p374_p7), 228352   ;;  %vm548_vm4 = vcmask (!%p374_p7), 236544   ;;  %vm560_vm5 = vcmask (!%p374_p7), 244736   ;;  %vm640_vm7 = vcmask (!%p374_p7), 64512  }
  0x16   : > { %s2334_s28 = smov (!%p374_p7), 16   ;;  %2108 = vmatprep.mubr.msk.f32.mxu1 (!%p374_p7), %vm2336_vm1, %v2335_v15  ;;  %2137 = vmatprep.mubr.msk.f32.mxu0 (!%p374_p7), %vm2336_vm1, %v2335_v15  ;;  %s497_s29 = sld [smem:[#allocation3]] (!%p374_p7)  ;;  %vm755_vm8 = vcmask (!%p374_p7), 195584   ;;  %vm757_vm9 = vcmask (!%p374_p7), 261120   ;;  %vm759_vm10 = vcmask (!%p374_p7), 326656   ;;  %vm761_vm13 = vcmask (!%p374_p7), 392192  }
  0x17   : > { %s2451_s30 = sld [smem:[#allocation3 + $0x3]] (!%p374_p7)  ;;  %s2465_s17 = sld [smem:[#allocation3 + $0x4]] (!%p374_p7)  ;;  %vm763_vm14 = vcmask (!%p374_p7), 457728  }
  0x18   : > { %s1996_s20 = sld [smem:[#allocation3 + $0x1]] (!%p374_p7)  ;;  %s2341_s12 = smov (!%p374_p7), 40  }
  0x19   : > { %s2342_s14 = smov (!%p374_p7), 48  }
  0x1a   : > { %v536_v12 = vstv (!%p374_p7), %s1999_s26  ;;  %s1997_s26 = sld [smem:[#allocation3 + $0x2]] (!%p374_p7) }
  0x1b   : > { %v859_v14 = vstv (!%p374_p7), %s2005_s27 }
  0x1c   : > { %s2852_s0 = smov (!%p448_p8, %s1972_s0), 1  ;;  %v2469_v23 = vstv %s497_s29  ;;  %s2340_s29 = smov 32  }
  0x1d   : > { %s2419_s19 = sshll.u32 %s2852_s0, 5  ;;  %v538_v25 = vstv %s2451_s30  ;;  %v861_v38 = vstv %s2465_s17  ;;  %s1993_s27 = sshll.u32 %s2852_s0, 3 }
  0x1e   : > { %s2425_s22 = scalar_lea.vmem %s2841_s5, %s2419_s19  ;;  %s2431_s25 = scalar_lea.vmem %s2842_s6, %s2419_s19  ;;  %v2507_v49 = vstv %s1996_s20 }
  0x1f   : > { %v2008_v0 = vld [vmem:[%s2425_s22 + $0x8] sm:$0xff]  ;;  %v523_v1 = vld [vmem:[%s2425_s22] sm:$0xff]  ;;  %s2457_s13 = scalar_lea.vmem %s2838_s2, %s2419_s19  ;;  %s2463_s16 = scalar_lea.vmem %s2837_s1, %s2419_s19 }
  0x20   : > { %v2009_v2 = vld [vmem:[%s2431_s25 + $0x8] sm:$0xff]  ;;  %v850_v3 = vmul.f32 %v2008_v0, %v2008_v0  ;;  %v525_v4 = vmul.f32 %v523_v1, %v523_v1  ;;  %v524_v5 = vld [vmem:[%s2431_s25] sm:$0xff]  ;;  %v537_v13 = vmul.f32 %v536_v12, %v523_v1  ;;  %v860_v16 = vmul.f32 %v2008_v0, %v859_v14  ;;  %s2503_s24 = scalar_lea.vmem %s2840_s4, %s2419_s19  ;;  %s491_s11 = scalar_lea.vmem %s2845_s9, %s1993_s27 }
  0x21   : > { %v854_v6 = vmul.f32 %v2009_v2, %v2009_v2  ;;  %v530_v7 = vmul.f32 %v524_v5, %v524_v5  ;;  %v2007_v21 = vld [vmem:[%s2457_s13 + $0x8] sm:$0xff]  ;;  %v522_v22 = vld [vmem:[%s2457_s13] sm:$0xff]  ;;  %v2516_v54 = vstv %s1997_s26  ;;  %s2532_s15 = scalar_lea.vmem %s2843_s7, %s2419_s19  ;;  %s2555_s20 = scalar_lea.vmem %s2839_s3, %s2419_s19 }
  0x22   : > { %v851_v8 = vsel %vm526_vm0, %v850_v3, 0.0  ;;  %v527_v9 = vsel %vm526_vm0, %v525_v4, 0.0  ;;  %v521_v24 = vld [vmem:[%s2463_s16] sm:$0xff]  ;;  %v2006_v33 = vld [vmem:[%s2463_s16 + $0x8] sm:$0xff]  ;;  %v2537_v4 = vld [vmem:[%s2425_s22 + $0x10] sm:$0xff]  ;;  %s2052_s19 = sshll.u32 %s2852_s0, 6 }
  0x23   : > { %852 = vadd.xlane.f32.xlu1 %v851_v8  ;;  %528 = vadd.xlane.f32.xlu0 %v527_v9  ;;  %v855_v10 = vsel %vm526_vm0, %v854_v6, 0.0  ;;  %v531_v11 = vsel %vm526_vm0, %v530_v7, 0.0  ;;  %v535_v30 = vmul.f32 %v2469_v23, %v521_v24  ;;  %v858_v40 = vmul.f32 %v2006_v33, %v2469_v23  ;;  %v557_v48 = vld [vmem:[%s2503_s24] sm:$0xff]  ;;  %v2010_v51 = vld [vmem:[%s2503_s24 + $0x8] sm:$0xff]  ;;  %v2035_v6 = vld [vmem:[%s2431_s25 + $0x18] sm:$0xff]  ;;  %s2572_s23 = scalar_lea.vmem %s2844_s8, %s2052_s19  ;;  %s2338_s26 = smov 8  }
  0x24   : > { %v559_v50 = vmul.f32 %v2507_v49, %v557_v48  ;;  %v2514_v52 = vld [vmem:[%s491_s11] sm:$0xff]  ;;  %v879_v57 = vmul.f32 %v2010_v51, %v2507_v49  ;;  %v2014_v3 = vld [vmem:[%s2532_s15 + $0x8] sm:$0xff]  ;;  %v1480_v8 = vmul.f32 %v2035_v6, %v2035_v6  ;;  %s2339_s27 = smov 24   ;;  %s2018_s30 = sld [smem:[#allocation3 + $0x9]] }
  0x25   : > { %vm501_vm6 = vcmp.eq.f32.partialorder %v2514_v52, 0.0  ;;  %v2013_v24 = vld [vmem:[%s2555_s20 + $0x8] sm:$0xff]  ;;  %v506_v48 = vld [vmem:[%s2572_s23 + $0x20] sm:$0xff]  ;;  %s2031_s11 = sld [smem:[#allocation3 + $0xa]]  ;;  %s2660_s17 = sld [smem:[#allocation3 + $0x5]] }
  0x26   : > { %v1481_v9 = vsel %vm526_vm0, %v1480_v8, 0.0  ;;  %s2662_s19 = sld [smem:[#allocation3 + $0x6]] }
  0x27   : > { %856 = vadd.xlane.f32.xlu1 %v855_v10  ;;  %532 = vadd.xlane.f32.xlu0 %v531_v11  ;;  %v2022_v10 = vld [vmem:[%s2431_s25 + $0x10] sm:$0xff]  ;;  %s2343_s25 = smov 56  }
  0x38   : > { %871 = vrot.lane.b32.xlu1 %v2009_v2, %s2334_s28 }
  0x3c   : > { %541 = vrot.lane.b32.xlu1 %v537_v13, %s2334_s28 }
  0x3d   : > { %551 = vrot.lane.b32.xlu0 %v524_v5, %s2334_s28  ;;  %v1163_v5 = vmul.f32 %v2537_v4, %v2537_v4 }
  0x3f   : > { %v1164_v7 = vsel %vm526_vm0, %v1163_v5, 0.0 }
  0x40   : > { %864 = vrot.lane.b32.xlu1 %v860_v16, %s2334_s28 }
  0xb0   : > { %v853_v17 = vpop.xlane.xlu1 %852  ;;  %v529_v18 = vpop.xlane.xlu0 %528 }
  0xb1   : > { %v539_v36 = vmul.f32 %v538_v25, %v529_v18  ;;  %v862_v43 = vmul.f32 %v861_v38, %v853_v17 }
  0xb4   : > { %v857_v19 = vpop.xlane.xlu1 %856  ;;  %v533_v20 = vpop.xlane.xlu0 %532 }
  0xb8   : > { %v872_v26 = vpop.permute.xlu1 %871  ;;  %v552_v27 = vpop.permute.xlu0 %551 }
  0xb9   : > { %v874_v28 = vsel %vm544_vm2, %v2007_v21, %v872_v26  ;;  %v554_v29 = vsel %vm544_vm2, %v522_v22, %v552_v27  ;;  %v653_v22 = vld [vmem:[%s2532_s15] sm:$0xff]  ;;  %v1167_v27 = vmul.f32 %v2022_v10, %v2022_v10 }
  0xba   : > { %v875_v31 = vsel %vm546_vm3, %v874_v28, 1.0  ;;  %v555_v32 = vsel %vm546_vm3, %v554_v29, 1.0  ;;  %v2560_v28 = vld [vmem:[%s2425_s22 + $0x18] sm:$0xff]  ;;  %s2053_s22 = sshll.u32 %s2852_s0, 4 }
  0xbb   : > { %v556_v34 = vsel %vm548_vm4, %v555_v32, %v533_v20  ;;  %v876_v35 = vsel %vm548_vm4, %v875_v31, %v857_v19  ;;  %v1168_v29 = vsel %vm526_vm0, %v1167_v27, 0.0 }
  0xbc   : > { %v542_v37 = vpop.permute.xlu1 %541  ;;  %2107 = vmatpush3.xpose.msk.msra.mxu1 %vm560_vm5, %v556_v34  ;;  %2136 = vmatpush3.xpose.msk.msra.mxu0 %vm560_vm5, %v876_v35  ;;  %v652_v34 = vld [vmem:[%s2555_s20] sm:$0xff]  ;;  %v2337_v35 = vmov 0.0|0.0  }
  0xbd   : > { %v545_v39 = vsel %vm544_vm2, %v535_v30, %v542_v37  ;;  %2111 = vmatprep.subr.mxu1 %v2335_v15  ;;  %2140 = vmatprep.subr.mxu0 %v2335_v15  ;;  %v1476_v30 = vmul.f32 %v2560_v28, %v2560_v28 }
  0xbe   : > { %v547_v41 = vsel %vm546_vm3, %v545_v39, %v539_v36  ;;  %v503_v39 = vld [vmem:[%s2572_s23 + $0x8] sm:$0xff] }
  0xbf   : > { %v549_v42 = vsel %vm548_vm4, %v547_v41, %v538_v25  ;;  %v1477_v31 = vsel %vm526_vm0, %v1476_v30, 0.0  ;;  %vm766_vm0 = vcmask 523264  }
  0xc0   : > { %v865_v44 = vpop.permute.xlu1 %864  ;;  %2109 = vmatmul.mubr.msk.f32.vlgmr.msra.gmra.mrb[0].mxu1 %vm560_vm5, %v549_v42 }
  0xc1   : > { %v867_v45 = vsel %vm544_vm2, %v858_v40, %v865_v44  ;;  %2113 = vmatprep.mubr.msk.f32.mxu1 %vm2336_vm1, %v2335_v15  ;;  %v505_v44 = vld [vmem:[%s2572_s23 + $0x18] sm:$0xff] }
  0xc2   : > { %v868_v46 = vsel %vm546_vm3, %v867_v45, %v862_v43  ;;  %v504_v43 = vld [vmem:[%s2572_s23 + $0x10] sm:$0xff] }
  0xc3   : > { %v869_v47 = vsel %vm548_vm4, %v868_v46, %v861_v38  ;;  %v502_v38 = vld [vmem:[%s2572_s23] sm:$0xff] }
  0xc4   : > { %2138 = vmatmul.mubr.msk.f32.vlgmr.msra.gmra.mrb[0].mxu0 %vm560_vm5, %v869_v47  ;;  %v2580_v42 = vpack.c.bf16 %v503_v39, %v502_v38  ;;  %v2593_v47 = vpack.c.bf16 %v505_v44, %v504_v43  ;;  %v2019_v38 = vld [vmem:[%s2463_s16 + $0x10] sm:$0xff] }
  0xc5   : > { %2142 = vmatprep.mubr.msk.f32.mxu0 %vm2336_vm1, %v2335_v15 }
 0x193   : > { %v633_v53 = vpop.f32.mrb[0].mxu1 }
 0x194   : > { %v634_v55 = vadd.f32 %v633_v53, %v559_v50  ;;  %v2110_v56 = vpop.f32.mrb[1].mxu1  ;;  %v507_v50 = vld [vmem:[%s2572_s23 + $0x28] sm:$0xff]  ;;  %v508_v53 = vld [vmem:[%s2572_s23 + $0x30] sm:$0xff] }
 0x195   : > { %v2608_v51 = vpack.c.bf16 %v507_v50, %v506_v48 }
 0x196   : > { %v638_v58 = vadd.f32 %v2516_v54, %v634_v55  ;;  %v509_v55 = vld [vmem:[%s2572_s23 + $0x38] sm:$0xff] }
 0x197   : > { %v952_v59 = vpop.f32.mrb[0].mxu0  ;;  %v2622_v56 = vpack.c.bf16 %v509_v55, %v508_v53 }
 0x198   : > { %v953_v60 = vadd.f32 %v952_v59, %v879_v57  ;;  %v2139_v61 = vpop.f32.mrb[1].mxu0  ;;  %v639_v62 = vsel %vm501_vm6, -3.4028235e+38, %v638_v58  ;;  %v1172_v57 = vstv %s2018_s30  ;;  %v1485_v58 = vstv %s2031_s11 }
 0x199   : > { %v641_v63 = vsel %vm640_vm7, %v639_v62, -inf  ;;  %v1173_v59 = vmul.f32 %v2537_v4, %v1172_v57 }
 0x19a   : > { %v956_v0 = vadd.f32 %v953_v60, %v2516_v54  ;;  %642 = vmax.xlane.f32.xlu0 %v641_v63  ;;  %v1486_v60 = vmul.f32 %v2560_v28, %v1485_v58 }
 0x19c   : > { %v957_v1 = vsel %vm501_vm6, -3.4028235e+38, %v956_v0 }
 0x19d   : > { %v958_v2 = vsel %vm640_vm7, %v957_v1, -inf }
 0x19e   : > { %959 = vmax.xlane.f32.xlu1 %v958_v2 }
 0x1af   : > { %974 = vrot.lane.b32.xlu1 %v2014_v3, %s2334_s28 }
 0x1d3   : > { %1165 = vadd.xlane.f32.xlu1 %v1164_v7  ;;  %v510_v7 = vlaneseq }
 0x1d7   : > { %1482 = vadd.xlane.f32.xlu1 %v1481_v9 }
 0x1e8   : > { %1184 = vrot.lane.b32.xlu1 %v2022_v10, %s2334_s28  ;;  %v511_v10 = vshrl.u32 %v510_v7, 7 }
 0x1ec   : > { %1497 = vrot.lane.b32.xlu1 %v2035_v6, %s2334_s28 }
 0x227   : > { %v643_v11 = vpop.xlane.xlu0 %642 }
 0x228   : > { %v644_v12 = vsub.f32 %v639_v62, %v643_v11 }
 0x22a   : > { %v645_v13 = vmul.f32 1.442695, %v644_v12 }
 0x22b   : > { %v960_v14 = vpop.xlane.xlu1 %959 }
 0x22c   : > { %2295 = vpow2.f32 %v645_v13  ;;  %v961_v16 = vsub.f32 %v957_v1, %v960_v14  ;;  %v514_v13 = vmul.u32 8, %v511_v10  ;;  %v2020_v14 = vld [vmem:[%s2457_s13 + $0x10] sm:$0xff] }
 0x22e   : > { %v962_v17 = vmul.f32 1.442695, %v961_v16 }
 0x22f   : > { %v975_v25 = vpop.permute.xlu1 %974 }
 0x230   : > { %2297 = vpow2.f32 %v962_v17  ;;  %v977_v26 = vsel %vm544_vm2, %v2013_v24, %v975_v25 }
 0x231   : > { %2141 = vmatpush3.msra.mxu0 %v977_v26 }
 0x232   : > { %2234 = vmatprep.subr.bf16.mxu0 %v2337_v35 }
 0x236   : > { %v2296_v18 = vpop.eup %2295 }
 0x237   : > { %v647_v19 = vsel %vm640_vm7, %v2296_v18, 0.0 }
 0x238   : > { %648 = vadd.xlane.f32.xlu0 %v647_v19  ;;  %v516_v19 = vadd.s32 8, %v514_v13 }
 0x23a   : > { %v2298_v20 = vpop.eup %2297 }
 0x23b   : > { %v964_v21 = vsel %vm640_vm7, %v2298_v20, 0.0 }
 0x23c   : > { %965 = vadd.xlane.f32.xlu0 %v964_v21 }
 0x252   : > { %655 = vrot.lane.b32.xlu0 %v653_v22, %s2334_s28  ;;  %v2033_v22 = vld [vmem:[%s2457_s13 + $0x18] sm:$0xff]  ;;  %s2345_s13 = smov 44  }
 0x260   : > { %v2652_v61 = vpop.xlane.xlu1 %1165 }
 0x264   : > { %v2654_v62 = vpop.xlane.xlu1 %1482 }
 0x268   : > { %v1185_v0 = vpop.permute.xlu1 %1184 }
 0x269   : > { %v1187_v24 = vsel %vm544_vm2, %v2020_v14, %v1185_v0  ;;  %v2036_v14 = vld [vmem:[%s2503_s24 + $0x18] sm:$0xff] }
 0x26a   : > { %v1188_v39 = vsel %vm546_vm3, %v1187_v24, 1.0 }
 0x26c   : > { %v1498_v2 = vpop.permute.xlu1 %1497 }
 0x26d   : > { %v1500_v30 = vsel %vm544_vm2, %v2033_v22, %v1498_v2 }
 0x271   : > { %1169 = vadd.xlane.f32.xlu0 %v1168_v29 }
 0x275   : > { %1478 = vadd.xlane.f32.xlu0 %v1477_v31 }
 0x2c5   : > { %v649_v32 = vpop.xlane.xlu0 %648 }
 0x2c6   : > { %2299 = vrcp.f32 %v649_v32 }
 0x2c9   : > { %v966_v33 = vpop.xlane.xlu0 %965 }
 0x2ca   : > { %2301 = vrcp.f32 %v966_v33  ;;  %v1174_v33 = vstv %s2660_s17 }
 0x2cd   : > { %v656_v36 = vpop.permute.xlu0 %655 }
 0x2ce   : > { %v658_v37 = vsel %vm544_vm2, %v652_v34, %v656_v36 }
 0x2cf   : > { %2112 = vmatpush3.msra.mxu1 %v658_v37  ;;  %v2032_v37 = vld [vmem:[%s2463_s16 + $0x18] sm:$0xff]  ;;  %s2346_s16 = smov 72  }
 0x2d0   : > { %v2300_v40 = vpop.eup %2299  ;;  %2222 = vmatprep.subr.bf16.mxu1 %v2337_v35  ;;  %v1484_v58 = vmul.f32 %v2032_v37, %v2469_v23 }
 0x2d1   : > { %v2578_v41 = vmul.f32 %v2300_v40, %v2296_v18  ;;  %v513_v18 = vand.u32 127, %v510_v7  ;;  %v1487_v40 = vstv %s2662_s19 }
 0x2d3   : > { %735 = vrot.lane.b32.xlu1 %v2578_v41, %s2334_s28  ;;  %732 = vrot.lane.b32.xlu0 %v2578_v41, %s2338_s26  ;;  %vm2673_vm11 = vcmp.ge.s32.totalorder %v513_v18, %v514_v13  ;;  %vm517_vm12 = vcmp.lt.s32.totalorder %v513_v18, %v516_v19  ;;  %v2023_v13 = vld [vmem:[%s2503_s24 + $0x10] sm:$0xff]  ;;  %s2347_s24 = smov 88  }
 0x2d4   : > { %v2302_v45 = vpop.eup %2301  ;;  %2114 = vmatmul.mubr.msk.f32.vlgmr.msra.gmra.mrb[2].mxu1 %vm640_vm7, %v2578_v41  ;;  %vm2692_vm15 = vmand %vm2673_vm11, %vm517_vm12 }
 0x2d5   : > { %v2590_v46 = vmul.f32 %v2302_v45, %v2298_v20  ;;  %2224 = vmatpush3.bf16.msra.mxu1 %v2580_v42  ;;  %2132 = vmatprep.mubr.msk.f32.mxu1 %vm2336_vm1, %v2335_v15  ;;  %v1501_v45 = vsel %vm546_vm3, %v1500_v30, 1.0 }
 0x2d6   : > { %2225 = vmatprep.subr.bf16.mxu1 %v2337_v35  ;;  %v1502_v2 = vsel %vm548_vm4, %v1501_v45, %v2654_v62 }
 0x2d7   : > { %1054 = vrot.lane.b32.xlu0 %v2590_v46, %s2334_s28  ;;  %1051 = vrot.lane.b32.xlu1 %v2590_v46, %s2338_s26 }
 0x2d8   : > { %2143 = vmatmul.mubr.msk.f32.vlgmr.msra.gmra.mrb[2].mxu0 %vm640_vm7, %v2590_v46 }
 0x2d9   : > { %2236 = vmatpush3.bf16.msra.mxu0 %v2580_v42  ;;  %2227 = vmatpush3.bf16.msra.mxu1 %v2593_v47 }
 0x2da   : > { %2237 = vmatprep.subr.bf16.mxu0 %v2337_v35  ;;  %2228 = vmatprep.subr.bf16.mxu1 %v2337_v35 }
 0x2db   : > { %1057 = vrot.lane.b32.xlu0 %v2590_v46, %s2339_s27  ;;  %738 = vrot.lane.b32.xlu1 %v2578_v41, %s2339_s27 }
 0x2dc   : > { %2161 = vmatprep.mubr.msk.f32.mxu0 %vm2336_vm1, %v2335_v15 }
 0x2dd   : > { %2239 = vmatpush3.bf16.msra.mxu0 %v2593_v47  ;;  %2230 = vmatpush3.bf16.msra.mxu1 %v2608_v51 }
 0x2de   : > { %2240 = vmatprep.subr.bf16.mxu0 %v2337_v35  ;;  %2231 = vmatprep.subr.bf16.mxu1 %v2337_v35 }
 0x2df   : > { %1060 = vrot.lane.b32.xlu0 %v2590_v46, %s2340_s29  ;;  %741 = vrot.lane.b32.xlu1 %v2578_v41, %s2340_s29 }
 0x2e1   : > { %2242 = vmatpush3.bf16.msra.mxu0 %v2608_v51  ;;  %2233 = vmatpush3.bf16.msra.mxu1 %v2622_v56 }
 0x2e2   : > { %2243 = vmatprep.subr.bf16.mxu0 %v2337_v35  ;;  %2164 = vmatprep.subr.mxu1 %v2335_v15 }
 0x2e3   : > { %1063 = vrot.lane.b32.xlu0 %v2590_v46, %s2341_s12  ;;  %744 = vrot.lane.b32.xlu1 %v2578_v41, %s2341_s12 }
 0x2e5   : > { %2245 = vmatpush3.bf16.msra.mxu0 %v2622_v56 }
 0x2e6   : > { %2193 = vmatprep.subr.mxu0 %v2335_v15 }
 0x2e7   : > { %1066 = vrot.lane.b32.xlu0 %v2590_v46, %s2342_s14  ;;  %747 = vrot.lane.b32.xlu1 %v2578_v41, %s2342_s14 }
 0x2eb   : > { %1069 = vrot.lane.b32.xlu0 %v2590_v46, %s2343_s25  ;;  %750 = vrot.lane.b32.xlu1 %v2578_v41, %s2343_s25 }
 0x2ef   : > { %1177 = vrot.lane.b32.xlu0 %v1173_v59, %s2334_s28  ;;  %1490 = vrot.lane.b32.xlu1 %v1486_v60, %s2334_s28  ;;  %v1171_v59 = vmul.f32 %v2019_v38, %v2469_v23 }
 0x2fe   : > { %v2656_v63 = vpop.xlane.xlu0 %1169 }
 0x302   : > { %v2658_v1 = vpop.xlane.xlu0 %1478 }
 0x303   : > { %v1488_v23 = vmul.f32 %v1487_v40, %v2658_v1 }
 0x345   : > { %v736_v3 = vpop.permute.xlu1 %735  ;;  %v733_v5 = vpop.permute.xlu0 %732 }
 0x346   : > { %v753_v20 = vsel %vm640_vm7, %v2578_v41, %v733_v5  ;;  %v1175_v5 = vmul.f32 %v1174_v33, %v2652_v61 }
 0x347   : > { %v754_v26 = vsel %vm544_vm2, %v753_v20, %v736_v3  ;;  %v1189_v3 = vsel %vm548_vm4, %v1188_v39, %v2656_v63  ;;  %v1192_v20 = vmul.f32 %v2023_v13, %v2507_v49 }
 0x349   : > { %v1052_v4 = vpop.permute.xlu1 %1051  ;;  %v1055_v6 = vpop.permute.xlu0 %1054 }
 0x34a   : > { %v1072_v21 = vsel %vm640_vm7, %v2590_v46, %v1052_v4 }
 0x34b   : > { %v1073_v25 = vsel %vm544_vm2, %v1072_v21, %v1055_v6  ;;  %v1505_v21 = vmul.f32 %v2036_v14, %v2507_v49 }
 0x34d   : > { %v739_v8 = vpop.permute.xlu1 %738  ;;  %v1058_v9 = vpop.permute.xlu0 %1057 }
 0x34e   : > { %v756_v31 = vsel %vm755_vm8, %v754_v26, %v739_v8  ;;  %v1074_v32 = vsel %vm755_vm8, %v1073_v25, %v1058_v9 }
 0x351   : > { %v742_v11 = vpop.permute.xlu1 %741  ;;  %v1061_v12 = vpop.permute.xlu0 %1060 }
 0x352   : > { %v758_v34 = vsel %vm757_vm9, %v756_v31, %v742_v11  ;;  %v1075_v36 = vsel %vm757_vm9, %v1074_v32, %v1061_v12 }
 0x355   : > { %v745_v16 = vpop.permute.xlu1 %744  ;;  %v1064_v17 = vpop.permute.xlu0 %1063 }
 0x356   : > { %v760_v41 = vsel %vm759_vm10, %v758_v34, %v745_v16  ;;  %v1076_v43 = vsel %vm759_vm10, %v1075_v36, %v1064_v17  ;;  %v2040_v34 = vld [vmem:[%s2532_s15 + $0x18] sm:$0xff] }
 0x359   : > { %v748_v27 = vpop.permute.xlu1 %747  ;;  %v1067_v28 = vpop.permute.xlu0 %1066 }
 0x35a   : > { %v762_v46 = vsel %vm761_vm13, %v760_v41, %v748_v27  ;;  %v1077_v48 = vsel %vm761_vm13, %v1076_v43, %v1067_v28 }
 0x35d   : > { %v751_v50 = vpop.permute.xlu1 %750  ;;  %v1070_v53 = vpop.permute.xlu0 %1069 }
 0x35e   : > { %v764_v55 = vsel %vm763_vm14, %v762_v46, %v751_v50  ;;  %v1078_v57 = vsel %vm763_vm14, %v1077_v48, %v1070_v53  ;;  %v2027_v46 = vld [vmem:[%s2532_s15 + $0x10] sm:$0xff]  ;;  %v2039_v48 = vld [vmem:[%s2555_s20 + $0x18] sm:$0xff]  ;;  %s2348_s15 = smov 4  }
 0x35f   : > { %v765_v60 = vsel %vm2692_vm15, %v764_v55, 0.0  ;;  %v1079_v0 = vsel %vm2692_vm15, %v1078_v57, 0.0 }
 0x360   : > { %2133 = vmatmul.mubr.msk.f32.vlgmr.msra.gmra.mrb[4].mxu1 %vm766_vm0, %v765_v60  ;;  %2162 = vmatmul.mubr.msk.f32.vlgmr.msra.gmra.mrb[4].mxu0 %vm766_vm0, %v1079_v0 }
 0x361   : > { %2165 = vmatpush3.xpose.msk.msra.mxu1 %vm560_vm5, %v1189_v3  ;;  %2194 = vmatpush3.xpose.msk.msra.mxu0 %vm560_vm5, %v1502_v2  ;;  %v1491_v4 = vpop.permute.xlu1 %1490  ;;  %v1178_v6 = vpop.permute.xlu0 %1177 }
 0x362   : > { %v1493_v7 = vsel %vm544_vm2, %v1484_v58, %v1491_v4  ;;  %v1180_v62 = vsel %vm544_vm2, %v1171_v59, %v1178_v6  ;;  %2166 = vmatprep.mubr.msk.f32.mxu1 %vm2336_vm1, %v2335_v15  ;;  %2195 = vmatprep.mubr.msk.f32.mxu0 %vm2336_vm1, %v2335_v15  ;;  %v2026_v58 = vld [vmem:[%s2555_s20 + $0x10] sm:$0xff]  ;;  %s2349_s20 = smov 116  }
 0x363   : > { %v1494_v61 = vsel %vm546_vm3, %v1493_v7, %v1488_v23  ;;  %v1181_v63 = vsel %vm546_vm3, %v1180_v62, %v1175_v5  ;;  %2169 = vmatprep.subr.mxu1 %v2335_v15  ;;  %2198 = vmatprep.subr.mxu0 %v2335_v15 }
 0x364   : > { %v1182_v1 = vsel %vm548_vm4, %v1181_v63, %v1174_v33  ;;  %v1495_v8 = vsel %vm548_vm4, %v1494_v61, %v1487_v40  ;;  %vm1812_vm4 = vcmask 719872  }
 0x365   : > { %2167 = vmatmul.mubr.msk.f32.vlgmr.msra.gmra.mrb[6].mxu1 %vm560_vm5, %v1182_v1  ;;  %2196 = vmatmul.mubr.msk.f32.vlgmr.msra.gmra.mrb[6].mxu0 %vm560_vm5, %v1495_v8  ;;  %vm1814_vm5 = vcmask 949248  }
 0x366   : > { %2171 = vmatprep.mubr.msk.f32.mxu1 %vm2336_vm1, %v2335_v15  ;;  %2200 = vmatprep.mubr.msk.f32.mxu0 %vm2336_vm1, %v2335_v15 }
 0x3a7   : > { %v2735_v9 = vpop.f32.mrb[2].mxu1 }
 0x3a8   : > { %v2115_v10 = vpop.f32.mrb[3].mxu1 }
 0x3ab   : > { %v2737_v11 = vpop.f32.mrb[2].mxu0 }
 0x3ac   : > { %v2144_v12 = vpop.f32.mrb[3].mxu0 }
 0x433   : > { %v2741_v16 = vpop.f32.mrb[4].mxu1  ;;  %v2743_v17 = vpop.f32.mrb[4].mxu0 }
 0x434   : > { %v2134_v18 = vpop.f32.mrb[5].mxu1  ;;  %v2163_v19 = vpop.f32.mrb[5].mxu0 }
 0x438   : > { %v1265_v22 = vpop.f32.mrb[6].mxu1  ;;  %v1578_v24 = vpop.f32.mrb[6].mxu0 }
 0x439   : > { %v1266_v25 = vadd.f32 %v1265_v22, %v1192_v20  ;;  %v1579_v26 = vadd.f32 %v1578_v24, %v1505_v21  ;;  %v2168_v27 = vpop.f32.mrb[7].mxu1  ;;  %v2197_v28 = vpop.f32.mrb[7].mxu0 }
 0x43b   : > { %v1269_v29 = vadd.f32 %v1266_v25, %v2516_v54  ;;  %v1582_v30 = vadd.f32 %v1579_v26, %v2516_v54 }
 0x43d   : > { %v1583_v31 = vsel %vm501_vm6, -3.4028235e+38, %v1582_v30  ;;  %v1270_v32 = vsel %vm501_vm6, -3.4028235e+38, %v1269_v29  ;;  %vm1816_vm6 = vcmask 31744  }
 0x43e   : > { %v1584_v33 = vsel %vm640_vm7, %v1583_v31, -inf  ;;  %v1271_v49 = vsel %vm640_vm7, %v1270_v32, -inf }
 0x43f   : > { %1585 = vmax.xlane.f32.xlu1 %v1584_v33  ;;  %1272 = vmax.xlane.f32.xlu0 %v1271_v49 }
 0x450   : > { %1600 = vrot.lane.b32.xlu1 %v2040_v34, %s2334_s28 }
 0x4cc   : > { %v1586_v36 = vpop.xlane.xlu1 %1585  ;;  %v1273_v37 = vpop.xlane.xlu0 %1272 }
 0x4cd   : > { %v1587_v54 = vsub.f32 %v1583_v31, %v1586_v36  ;;  %v1274_v38 = vsub.f32 %v1270_v32, %v1273_v37 }
 0x4cf   : > { %v1275_v39 = vmul.f32 1.442695, %v1274_v38  ;;  %v1588_v40 = vmul.f32 1.442695, %v1587_v54 }
 0x4d0   : > { %v1601_v50 = vpop.permute.xlu1 %1600 }
 0x4d1   : > { %2303 = vpow2.f32 %v1275_v39  ;;  %v1603_v53 = vsel %vm544_vm2, %v2039_v48, %v1601_v50 }
 0x4d2   : > { %2305 = vpow2.f32 %v1588_v40  ;;  %2199 = vmatpush3.msra.mxu0 %v1603_v53 }
 0x4d3   : > { %2258 = vmatprep.subr.bf16.mxu0 %v2337_v35 }
 0x4db   : > { %v2304_v52 = vpop.eup %2303 }
 0x4dc   : > { %v1277_v41 = vsel %vm640_vm7, %v2304_v52, 0.0  ;;  %v2306_v43 = vpop.eup %2305 }
 0x4dd   : > { %1278 = vadd.xlane.f32.xlu0 %v1277_v41  ;;  %v1590_v45 = vsel %vm640_vm7, %v2306_v43, 0.0 }
 0x4e1   : > { %1591 = vadd.xlane.f32.xlu0 %v1590_v45 }
 0x4f7   : > { %1287 = vrot.lane.b32.xlu0 %v2027_v46, %s2334_s28 }
 0x56a   : > { %v1279_v55 = vpop.xlane.xlu0 %1278 }
 0x56b   : > { %2307 = vrcp.f32 %v1279_v55 }
 0x56e   : > { %v1592_v57 = vpop.xlane.xlu0 %1591 }
 0x56f   : > { %2309 = vrcp.f32 %v1592_v57 }
 0x572   : > { %v1288_v59 = vpop.permute.xlu0 %1287 }
 0x573   : > { %v1290_v60 = vsel %vm544_vm2, %v2026_v58, %v1288_v59 }
 0x574   : > { %2170 = vmatpush3.msra.mxu1 %v1290_v60 }
 0x575   : > { %v2308_v0 = vpop.eup %2307  ;;  %2246 = vmatprep.subr.bf16.mxu1 %v2337_v35 }
 0x576   : > { %v1281_v2 = vmul.f32 %v2308_v0, %v2304_v52 }
 0x578   : > { %1364 = vrot.lane.b32.xlu1 %v1281_v2, %s2338_s26  ;;  %2172 = vmatmul.mubr.msk.f32.vlgmr.msra.gmra.mrb[8].mxu1 %vm640_vm7, %v1281_v2 }
 0x579   : > { %v2310_v3 = vpop.eup %2309  ;;  %2248 = vmatpush3.bf16.msra.mxu1 %v2580_v42  ;;  %2190 = vmatprep.mubr.msk.f32.mxu1 %vm2336_vm1, %v2335_v15 }
 0x57a   : > { %v1594_v5 = vmul.f32 %v2310_v3, %v2306_v43  ;;  %2249 = vmatprep.subr.bf16.mxu1 %v2337_v35 }
 0x57c   : > { %1367 = vrot.lane.b32.xlu1 %v1281_v2, %s2334_s28  ;;  %1677 = vrot.lane.b32.xlu0 %v1594_v5, %s2338_s26  ;;  %s496_s26 = scalar_lea.vmem %s2846_s10, %s2053_s22 }
 0x57d   : > { %2201 = vmatmul.mubr.msk.f32.vlgmr.msra.gmra.mrb[8].mxu0 %vm640_vm7, %v1594_v5  ;;  %2251 = vmatpush3.bf16.msra.mxu1 %v2593_v47 }
 0x57e   : > { %2260 = vmatpush3.bf16.msra.mxu0 %v2580_v42  ;;  %2252 = vmatprep.subr.bf16.mxu1 %v2337_v35 }
 0x57f   : > { %2261 = vmatprep.subr.bf16.mxu0 %v2337_v35  ;;  %2219 = vmatprep.mubr.msk.f32.mxu0 %vm2336_vm1, %v2335_v15  ;;  %vm1808_vm1 = vcmask 359424  }
 0x580   : > { %1370 = vrot.lane.b32.xlu1 %v1281_v2, %s2339_s27  ;;  %1680 = vrot.lane.b32.xlu0 %v1594_v5, %s2334_s28  ;;  %s2344_s28 = smov 28  }
 0x581   : > { %2254 = vmatpush3.bf16.msra.mxu1 %v2608_v51 }
 0x582   : > { %2263 = vmatpush3.bf16.msra.mxu0 %v2593_v47  ;;  %2255 = vmatprep.subr.bf16.mxu1 %v2337_v35 }
 0x583   : > { %2264 = vmatprep.subr.bf16.mxu0 %v2337_v35 }
 0x584   : > { %1373 = vrot.lane.b32.xlu1 %v1281_v2, %s2340_s29  ;;  %1683 = vrot.lane.b32.xlu0 %v1594_v5, %s2339_s27 }
 0x585   : > { %2257 = vmatpush3.bf16.msra.mxu1 %v2622_v56 }
 0x586   : > { %2266 = vmatpush3.bf16.msra.mxu0 %v2608_v51 }
 0x587   : > { %2267 = vmatprep.subr.bf16.mxu0 %v2337_v35 }
 0x588   : > { %1376 = vrot.lane.b32.xlu1 %v1281_v2, %s2341_s12  ;;  %1686 = vrot.lane.b32.xlu0 %v1594_v5, %s2340_s29 }
 0x58a   : > { %2269 = vmatpush3.bf16.msra.mxu0 %v2622_v56 }
 0x58c   : > { %1379 = vrot.lane.b32.xlu1 %v1281_v2, %s2342_s14  ;;  %1689 = vrot.lane.b32.xlu0 %v1594_v5, %s2341_s12 }
 0x590   : > { %1382 = vrot.lane.b32.xlu1 %v1281_v2, %s2343_s25  ;;  %1692 = vrot.lane.b32.xlu0 %v1594_v5, %s2342_s14 }
 0x594   : > { %1695 = vrot.lane.b32.xlu1 %v1594_v5, %s2343_s25  ;;  %1780 = vrot.lane.b32.xlu0 %v2741_v16, %s2344_s28 }
 0x598   : > { %1784 = vrot.lane.b32.xlu1 %v2737_v11, %s2345_s13  ;;  %1788 = vrot.lane.b32.xlu0 %v2743_v17, %s2346_s16 }
 0x5ea   : > { %v1365_v15 = vpop.permute.xlu1 %1364 }
 0x5eb   : > { %v1385_v7 = vsel %vm640_vm7, %v1281_v2, %v1365_v15 }
 0x5ee   : > { %v1368_v35 = vpop.permute.xlu1 %1367  ;;  %v1678_v42 = vpop.permute.xlu0 %1677 }
 0x5ef   : > { %v1386_v62 = vsel %vm544_vm2, %v1385_v7, %v1368_v35  ;;  %v1698_v10 = vsel %vm640_vm7, %v1594_v5, %v1678_v42 }
 0x5f2   : > { %v1371_v47 = vpop.permute.xlu1 %1370  ;;  %v1681_v51 = vpop.permute.xlu0 %1680 }
 0x5f3   : > { %v1387_v1 = vsel %vm755_vm8, %v1386_v62, %v1371_v47  ;;  %v1699_v12 = vsel %vm544_vm2, %v1698_v10, %v1681_v51  ;;  %vm1810_vm2 = vcmask 588800  }
 0x5f6   : > { %v1374_v56 = vpop.permute.xlu1 %1373  ;;  %v1684_v23 = vpop.permute.xlu0 %1683 }
 0x5f7   : > { %v1388_v8 = vsel %vm757_vm9, %v1387_v1, %v1374_v56  ;;  %v1700_v16 = vsel %vm755_vm8, %v1699_v12, %v1684_v23 }
 0x5fa   : > { %v1377_v4 = vpop.permute.xlu1 %1376  ;;  %v1687_v6 = vpop.permute.xlu0 %1686 }
 0x5fb   : > { %v1389_v11 = vsel %vm759_vm10, %v1388_v8, %v1377_v4  ;;  %v1701_v19 = vsel %vm757_vm9, %v1700_v16, %v1687_v6 }
 0x5fe   : > { %v1380_v61 = vpop.permute.xlu1 %1379  ;;  %v1690_v63 = vpop.permute.xlu0 %1689 }
 0x5ff   : > { %v1390_v13 = vsel %vm761_vm13, %v1389_v11, %v1380_v61  ;;  %v1702_v21 = vsel %vm759_vm10, %v1701_v19, %v1690_v63 }
 0x602   : > { %v1383_v14 = vpop.permute.xlu1 %1382  ;;  %v1693_v18 = vpop.permute.xlu0 %1692 }
 0x603   : > { %v1391_v17 = vsel %vm763_vm14, %v1390_v13, %v1383_v14  ;;  %v1703_v22 = vsel %vm761_vm13, %v1702_v21, %v1693_v18 }
 0x604   : > { %v1392_v20 = vsel %vm2692_vm15, %v1391_v17, 0.0 }
 0x605   : > { %2191 = vmatmul.mubr.msk.f32.vlgmr.msra.gmra.mrb[10].mxu1 %vm766_vm0, %v1392_v20 }
 0x606   : > { %v1696_v24 = vpop.permute.xlu1 %1695  ;;  %v1781_v44 = vpop.permute.xlu0 %1780 }
 0x607   : > { %v1704_v25 = vsel %vm763_vm14, %v1703_v22, %v1696_v24  ;;  %v1807_v36 = vsel %vm546_vm3, %v2735_v9, %v1781_v44 }
 0x608   : > { %v1705_v26 = vsel %vm2692_vm15, %v1704_v25, 0.0 }
 0x609   : > { %2220 = vmatmul.mubr.msk.f32.vlgmr.msra.gmra.mrb[10].mxu0 %vm766_vm0, %v1705_v26 }
 0x60a   : > { %v1785_v34 = vpop.permute.xlu1 %1784  ;;  %v1789_v54 = vpop.permute.xlu0 %1788 }
 0x60b   : > { %v1809_v37 = vsel %vm1808_vm1, %v1807_v36, %v1785_v34 }
 0x60c   : > { %v1811_v39 = vsel %vm1810_vm2, %v1809_v37, %v1789_v54 }
 0x64b   : > { %v1360_v27 = vpop.f32.mrb[8].mxu1 }
 0x64c   : > { %1792 = vrot.lane.b32.xlu1 %v1360_v27, %s2347_s24  ;;  %v2173_v28 = vpop.f32.mrb[9].mxu1 }
 0x650   : > { %v1673_v29 = vpop.f32.mrb[8].mxu0 }
 0x651   : > { %v2202_v30 = vpop.f32.mrb[9].mxu0  ;;  %1800 = vrot.lane.b32.xlu1 %v1673_v29, %s2348_s15 }
 0x6be   : > { %v1793_v38 = vpop.permute.xlu1 %1792 }
 0x6bf   : > { %v1813_v40 = vsel %vm1812_vm4, %v1811_v39, %v1793_v38 }
 0x6c3   : > { %v1801_v43 = vpop.permute.xlu1 %1800 }
 0x6d8   : > { %v1462_v31 = vpop.f32.mrb[10].mxu1 }
 0x6d9   : > { %1796 = vrot.lane.b32.xlu0 %v1462_v31, %s2349_s20  ;;  %v2192_v32 = vpop.f32.mrb[11].mxu1 }
 0x6dc   : > { %v1775_v33 = vpop.f32.mrb[10].mxu0 }
 0x6dd   : > { %v2221_v49 = vpop.f32.mrb[11].mxu0  ;;  %1804 = vrot.lane.b32.xlu0 %v1775_v33, %s2340_s29 }
 0x74b   : > { %v1797_v52 = vpop.permute.xlu0 %1796 }
 0x74c   : > { %v1815_v41 = vsel %vm1814_vm5, %v1813_v40, %v1797_v52  ;;  %v1817_v45 = vsel %vm1816_vm6, %v1797_v52, %v1801_v43 }
 0x74d   : > { %1819 = vst [vmem:[%s496_s26] sm:$0xff] %v1815_v41 }
 0x74f   : > { %v1805_v9 = vpop.permute.xlu0 %1804 }
 0x750   : > { %v1818_v46 = vsel %vm757_vm9, %v1817_v45, %v1805_v9 }
 0x751   : > { %1820 = vst.msk [vmem:[%s496_s26 + $0x8] sm:$0xff] %vm761_vm13, %v1818_v46 }
 0x752 PF: > { %s26_s18 = sadd.s32 1, %s2331_s18  }
 0x753   : > { %p23_p9 = scmp.ge.s32.totalorder %s26_s18, 4  }
 0x755   :  { %25 = sbr.rel (!%p23_p9) target bundleno = 16 (0x10), region = 131 }

</bundles_post_ra>
